<compile_context>
chip_gen: v5e
topology: v5e:2x2
jax: 0.10.0
libtpu: 0.0.40
codegen_flags: <defaults>
</compile_context>

<pallas_src>
import functools

import jax
import jax.numpy as jnp
from jax.experimental import pallas as pl
from jax.experimental.pallas import tpu as pltpu


def _merge_ln_linear_kernel(x_ref, g_ref, b_ref, w_ref, o_ref, *, eps):
    # x_ref: (t_r, 2, Wo, 2C) -- a row-block of 2x2 neighbourhoods; the W-parity
    #        is already packed along the lane axis by the free wrapper reshape.
    # g_ref/b_ref: (1, 4C) in the kernel's "natural" feature order.
    # w_ref: (4C, out_dim) rows in natural order.   o_ref: (t_r, Wo, out_dim).
    x = x_ref[...]
    xa = x[:, 0, :, :]                       # even-H rows -> features [x0 | x2]
    xb = x[:, 1, :, :]                       # odd-H rows  -> features [x1 | x3]
    xf = jnp.concatenate([xa, xb], axis=-1).astype(jnp.float32)   # (t_r, Wo, 4C)

    # LayerNorm over 4C: f32 statistics, biased variance (matches torch).
    mean = jnp.mean(xf, axis=-1, keepdims=True)
    xc = xf - mean
    var = jnp.mean(xc * xc, axis=-1, keepdims=True)
    g = g_ref[...].astype(jnp.float32).reshape(1, 1, -1)
    b = b_ref[...].astype(jnp.float32).reshape(1, 1, -1)
    xn = xc * jax.lax.rsqrt(var + eps) * g + b

    # Bias-free Linear 4C -> out_dim on the MXU, in the weight dtype (bf16 by
    # default) with f32 accumulation.
    t_r, wo, c4 = xn.shape
    xn2 = xn.reshape(t_r * wo, c4).astype(w_ref.dtype)
    y = jnp.dot(xn2, w_ref[...], preferred_element_type=jnp.float32)
    o_ref[...] = y.reshape(t_r, wo, -1).astype(o_ref.dtype)


def _to_natural_order(a, c):
    # Torch feature order [x0 | x1 | x2 | x3] -> kernel order [x0 | x2 | x1 | x3]
    # along axis 0 (the permutation is its own inverse: swap the middle blocks).
    return jnp.concatenate([a[:c], a[2 * c:3 * c], a[c:2 * c], a[3 * c:]], axis=0)


def _pick_rows_per_tile(rows, wo, c4, out_dim, x_bytes, w_bytes, out_bytes,
                        target_tokens, vmem_budget_bytes):
    """Rows (of B*Ho) per grid step so that ~target_tokens tokens fit in VMEM."""
    wo = max(int(wo), 1)
    # Single-buffered residents: weight + gamma/beta (f32).
    resident = c4 * out_dim * w_bytes + 2 * c4 * 4
    # Per-row bytes: double-buffered input + output blocks plus ~3 f32-sized
    # temporaries of the (wo, 4C) feature tile built inside the kernel.
    per_row = (2 * wo * c4 * x_bytes + 2 * wo * out_dim * out_bytes
               + 3 * wo * c4 * 4)
    budget_rows = max(1, (vmem_budget_bytes - resident) // per_row)
    target_rows = max(1, target_tokens // wo)
    t_r = max(1, min(rows, budget_rows, target_rows))
    # Prefer >= ~8 grid steps (v7x megacore / pipelining) as long as a tile
    # still carries >= ~256 tokens.
    t_r = min(t_r, max(-(-rows // 8), max(1, 256 // wo)))
    return int(t_r)


def patch_merging_2d(x, gamma, beta, w_t, *, eps=1e-5,
                     matmul_dtype=jnp.bfloat16,
                     target_tokens=1024,
                     vmem_budget_bytes=40 * 1024 * 1024):
    """x: (B, H, W, C); gamma/beta: (4C,); w_t: (4C, out_dim) (Linear weight.T)."""
    B, H, W, C = x.shape
    c4 = 4 * C
    out_dim = w_t.shape[1]
    assert gamma.shape == (c4,) and beta.shape == (c4,) and w_t.shape[0] == c4

    if (H % 2) or (W % 2):
        # TODO(synk): rare odd-size path still pays one jnp.pad copy; could be
        # folded into the kernel with masked tail reads if it ever matters.
        x = jnp.pad(x, ((0, 0), (0, H % 2), (0, W % 2), (0, 0)))
    Hp, Wp = x.shape[1], x.shape[2]
    Ho, Wo = Hp // 2, Wp // 2
    R = B * Ho

    # Free (bitcast) reshape: (B, 2*Ho, 2*Wo, C) -> (B*Ho, 2, Wo, 2C).
    # Lane axis now holds [w-even C | w-odd C]; dim 1 is the H parity.
    x5 = x.reshape(R, 2, Wo, 2 * C)

    # One-time tiny reorders so the kernel can consume the natural feature order.
    g_nat = _to_natural_order(gamma, C).reshape(1, c4).astype(jnp.float32)
    b_nat = _to_natural_order(beta, C).reshape(1, c4).astype(jnp.float32)
    w_nat = _to_natural_order(w_t, C).astype(matmul_dtype)

    t_r = _pick_rows_per_tile(
        R, Wo, c4, out_dim,
        x_bytes=jnp.dtype(x.dtype).itemsize,
        w_bytes=jnp.dtype(w_nat.dtype).itemsize,
        out_bytes=jnp.dtype(x.dtype).itemsize,
        target_tokens=target_tokens,
        vmem_budget_bytes=vmem_budget_bytes)
    grid = (pl.cdiv(R, t_r),)

    kernel = functools.partial(_merge_ln_linear_kernel, eps=eps)

    def build(single_buffer_params):
        pm = ({"pipeline_mode": pl.Buffered(1)} if single_buffer_params else {})
        in_specs = [
            # One contiguous block of t_r "double rows" per grid step.
            pl.BlockSpec((t_r, 2, Wo, 2 * C), lambda i: (i, 0, 0, 0)),
            # Constant-index params: single-buffered residents.
            pl.BlockSpec((1, c4), lambda i: (0, 0), **pm),
            pl.BlockSpec((1, c4), lambda i: (0, 0), **pm),
            pl.BlockSpec((c4, out_dim), lambda i: (0, 0), **pm),
        ]
        out_specs = pl.BlockSpec((t_r, Wo, out_dim), lambda i: (i, 0, 0))
        return pl.pallas_call(
            kernel,
            out_shape=jax.ShapeDtypeStruct((R, Wo, out_dim), x.dtype),
            grid_spec=pltpu.PrefetchScalarGridSpec(
                num_scalar_prefetch=0,
                grid=grid,
                in_specs=in_specs,
                out_specs=out_specs,
            ),
            compiler_params=pltpu.CompilerParams(
                dimension_semantics=("parallel",),
                vmem_limit_bytes=48 * 1024 * 1024,   # fits v7x (64 MiB physical)
            ),
        )

    try:
        out3 = build(True)(x5, g_nat, b_nat, w_nat)
    except Exception:
        # Fallback if pl.Buffered(1) is rejected by this JAX version.
        out3 = build(False)(x5, g_nat, b_nat, w_nat)

    return out3.reshape(B, Ho, Wo, out_dim)      # free split of the leading dim


# ----------------------------- test-only reference ---------------------------

def _patch_merging_pad_ref(x):
    B, H, W, C = x.shape
    if (H % 2) or (W % 2):
        x = jnp.pad(x, ((0, 0), (0, H % 2), (0, W % 2), (0, 0)))
    x0 = x[:, 0::2, 0::2, :]
    x1 = x[:, 1::2, 0::2, :]
    x2 = x[:, 0::2, 1::2, :]
    x3 = x[:, 1::2, 1::2, :]
    return jnp.concatenate([x0, x1, x2, x3], axis=-1)


def _reference(x, gamma, beta, w_t, eps=1e-5, matmul_dtype=jnp.float32):
    xm = _patch_merging_pad_ref(x).astype(jnp.float32)
    mean = jnp.mean(xm, axis=-1, keepdims=True)
    var = jnp.mean((xm - mean) ** 2, axis=-1, keepdims=True)
    xn = (xm - mean) * jax.lax.rsqrt(var + eps) * gamma + beta
    sh = xn.shape
    y = jnp.dot(xn.reshape(-1, sh[-1]).astype(matmul_dtype),
                w_t.astype(matmul_dtype),
                preferred_element_type=jnp.float32)
    return y.reshape(sh[:-1] + (w_t.shape[1],))


if __name__ == "__main__":
    # Small config consistent with the module: dim (= C) = 4, out_dim = 2*dim.
    B, H, W, C = 2, 16, 16, 4
    out_dim = 2 * C

    key = jax.random.PRNGKey(0)
    kx, kw, kg, kb = jax.random.split(key, 4)

    x = jax.random.normal(kx, (B, H, W, C), dtype=jnp.float32)
    # nn.Linear(4*dim, 2*dim, bias=False): weight (out, in); store transposed.
    w = jax.random.normal(kw, (out_dim, 4 * C), dtype=jnp.float32) * 0.05
    w_t = w.T                                                   # (4C, out_dim)
    gamma = jnp.ones((4 * C,), jnp.float32) + 0.01 * jax.random.normal(kg, (4 * C,))
    beta = 0.01 * jax.random.normal(kb, (4 * C,), dtype=jnp.float32)

    # 1) f32 matmul path: exact parity with the full-precision reference.
    out_f32 = jax.block_until_ready(
        patch_merging_2d(x, gamma, beta, w_t, matmul_dtype=jnp.float32))
    ref_f32 = _reference(x, gamma, beta, w_t, matmul_dtype=jnp.float32)
    assert out_f32.shape == (B, H // 2, W // 2, out_dim), out_f32.shape
    assert jnp.allclose(out_f32, ref_f32.astype(out_f32.dtype),
                        atol=1e-4, rtol=1e-4), (
        float(jnp.max(jnp.abs(out_f32 - ref_f32))))

    # 2) default bf16 MXU path: compare against a matched-precision reference.
    out_bf = jax.block_until_ready(patch_merging_2d(x, gamma, beta, w_t))
    ref_bf = _reference(x, gamma, beta, w_t, matmul_dtype=jnp.bfloat16)
    assert jnp.allclose(out_bf, ref_bf.astype(out_bf.dtype),
                        atol=5e-3, rtol=5e-3), (
        float(jnp.max(jnp.abs(out_bf - ref_bf))))

    print("KERNEL_OK")
</pallas_src>

<mosaic_0001>
module attributes {stable_mosaic.version = 11 : i64} {
  func.func @_merge_ln_linear_kernel(%arg0: i32, %arg1: memref<16x2x8x8xf32, #tpu.memory_space<vmem>>, %arg2: memref<1x16xf32, #tpu.memory_space<vmem>>, %arg3: memref<1x16xf32, #tpu.memory_space<vmem>>, %arg4: memref<16x8xf32, #tpu.memory_space<vmem>>, %arg5: memref<16x8x8xf32, #tpu.memory_space<vmem>>) attributes {dimension_semantics = [#tpu.dimension_semantics<parallel>], iteration_bounds = array<i64: 1>, scalar_prefetch = 0 : i64, scratch_operands = 0 : i64, tpu.core_type = #tpu.core_type<tc>, window_params = [{transform_indices = @transform_0, window_bounds = array<i64: 16, 2, 8, 8>}, {pipeline_mode = #tpu.pipeline_mode<synchronous>, transform_indices = @transform_1, window_bounds = array<i64: 1, 16>}, {pipeline_mode = #tpu.pipeline_mode<synchronous>, transform_indices = @transform_2, window_bounds = array<i64: 1, 16>}, {pipeline_mode = #tpu.pipeline_mode<synchronous>, transform_indices = @transform_3, window_bounds = array<i64: 16, 8>}, {transform_indices = @transform_4, window_bounds = array<i64: 16, 8, 8>}]} {
    %c0 = arith.constant 0 : index
    %c0_0 = arith.constant 0 : index
    %c0_1 = arith.constant 0 : index
    %c0_2 = arith.constant 0 : index
    %0 = vector.load %arg1[%c0, %c0_0, %c0_1, %c0_2] : memref<16x2x8x8xf32, #tpu.memory_space<vmem>>, vector<16x2x8x8xf32>
    %1 = vector.extract_strided_slice %0 {offsets = [0, 0, 0, 0], sizes = [16, 1, 8, 8], strides = [1, 1, 1, 1]} : vector<16x2x8x8xf32> to vector<16x1x8x8xf32>
    %2 = vector.shape_cast %1 : vector<16x1x8x8xf32> to vector<16x8x8xf32>
    %3 = vector.extract_strided_slice %0 {offsets = [0, 1, 0, 0], sizes = [16, 1, 8, 8], strides = [1, 1, 1, 1]} : vector<16x2x8x8xf32> to vector<16x1x8x8xf32>
    %4 = vector.shape_cast %3 : vector<16x1x8x8xf32> to vector<16x8x8xf32>
    %5 = tpu.concatenate %2, %4 in 2 : vector<16x8x8xf32>, vector<16x8x8xf32> -> vector<16x8x16xf32>
    %cst = arith.constant dense<0.000000e+00> : vector<16x8xf32>
    %6 = vector.multi_reduction <add>, %5, %cst [2] : vector<16x8x16xf32> to vector<16x8xf32>
    %7 = vector.shape_cast %6 : vector<16x8xf32> to vector<16x8x1xf32>
    %cst_3 = arith.constant 1.600000e+01 : f32
    %8 = vector.broadcast %cst_3 : f32 to vector<16x8x1xf32>
    %9 = arith.divf %7, %8 : vector<16x8x1xf32>
    %10 = vector.broadcast %9 : vector<16x8x1xf32> to vector<16x8x16xf32>
    %11 = arith.subf %5, %10 : vector<16x8x16xf32>
    %12 = arith.mulf %11, %11 : vector<16x8x16xf32>
    %cst_4 = arith.constant dense<0.000000e+00> : vector<16x8xf32>
    %13 = vector.multi_reduction <add>, %12, %cst_4 [2] : vector<16x8x16xf32> to vector<16x8xf32>
    %14 = vector.shape_cast %13 : vector<16x8xf32> to vector<16x8x1xf32>
    %cst_5 = arith.constant 1.600000e+01 : f32
    %15 = vector.broadcast %cst_5 : f32 to vector<16x8x1xf32>
    %16 = arith.divf %14, %15 : vector<16x8x1xf32>
    %c0_6 = arith.constant 0 : index
    %c0_7 = arith.constant 0 : index
    %17 = vector.load %arg2[%c0_6, %c0_7] : memref<1x16xf32, #tpu.memory_space<vmem>>, vector<1x16xf32>
    %18 = vector.shape_cast %17 : vector<1x16xf32> to vector<1x1x16xf32>
    %c0_8 = arith.constant 0 : index
    %c0_9 = arith.constant 0 : index
    %19 = vector.load %arg3[%c0_8, %c0_9] : memref<1x16xf32, #tpu.memory_space<vmem>>, vector<1x16xf32>
    %20 = vector.shape_cast %19 : vector<1x16xf32> to vector<1x1x16xf32>
    %cst_10 = arith.constant 9.99999974E-6 : f32
    %21 = vector.broadcast %cst_10 : f32 to vector<16x8x1xf32>
    %22 = arith.addf %16, %21 : vector<16x8x1xf32>
    %23 = math.rsqrt %22 : vector<16x8x1xf32>
    %24 = vector.broadcast %23 : vector<16x8x1xf32> to vector<16x8x16xf32>
    %25 = arith.mulf %11, %24 : vector<16x8x16xf32>
    %26 = vector.broadcast %18 : vector<1x1x16xf32> to vector<16x8x16xf32>
    %27 = arith.mulf %25, %26 : vector<16x8x16xf32>
    %28 = vector.broadcast %20 : vector<1x1x16xf32> to vector<16x8x16xf32>
    %29 = arith.addf %27, %28 : vector<16x8x16xf32>
    %30 = vector.shape_cast %29 : vector<16x8x16xf32> to vector<128x16xf32>
    %c0_11 = arith.constant 0 : index
    %c0_12 = arith.constant 0 : index
    %31 = vector.load %arg4[%c0_11, %c0_12] : memref<16x8xf32, #tpu.memory_space<vmem>>, vector<16x8xf32>
    %cst_13 = arith.constant dense<0.000000e+00> : vector<128x8xf32>
    %32 = tpu.matmul %30, %31, %cst_13 {dimension_numbers = #tpu.dot_dimension_numbers<[1], [0], [0], [1], [0, 0, 1, 1], [], []>} : vector<128x16xf32>, vector<16x8xf32>, vector<128x8xf32> -> vector<128x8xf32>
    %33 = vector.shape_cast %32 : vector<128x8xf32> to vector<16x8x8xf32>
    %c0_14 = arith.constant 0 : index
    %c0_15 = arith.constant 0 : index
    %c0_16 = arith.constant 0 : index
    %34 = vector.load %arg5[%c0_14, %c0_15, %c0_16] : memref<16x8x8xf32, #tpu.memory_space<vmem>>, vector<16x8x8xf32>
    tpu.vector_store %arg5[%c0_14, %c0_15, %c0_16], %33 {strides = array<i32>} : memref<16x8x8xf32, #tpu.memory_space<vmem>>, vector<16x8x8xf32>,
    return
  }
  func.func @transform_0(%arg0: i32) -> (i32, i32, i32, i32) {
    %c0_i32 = arith.constant 0 : i32
    %c0_i32_0 = arith.constant 0 : i32
    %c0_i32_1 = arith.constant 0 : i32
    %c0_i32_2 = arith.constant 0 : i32
    return %arg0, %c0_i32, %c0_i32_0, %c0_i32_1 : i32, i32, i32, i32
  }
  func.func @transform_1(%arg0: i32) -> (i32, i32) {
    %c0_i32 = arith.constant 0 : i32
    %c0_i32_0 = arith.constant 0 : i32
    %c0_i32_1 = arith.constant 0 : i32
    return %c0_i32, %c0_i32_0 : i32, i32
  }
  func.func @transform_2(%arg0: i32) -> (i32, i32) {
    %c0_i32 = arith.constant 0 : i32
    %c0_i32_0 = arith.constant 0 : i32
    %c0_i32_1 = arith.constant 0 : i32
    return %c0_i32, %c0_i32_0 : i32, i32
  }
  func.func @transform_3(%arg0: i32) -> (i32, i32) {
    %c0_i32 = arith.constant 0 : i32
    %c0_i32_0 = arith.constant 0 : i32
    %c0_i32_1 = arith.constant 0 : i32
    return %c0_i32, %c0_i32_0 : i32, i32
  }
  func.func @transform_4(%arg0: i32) -> (i32, i32, i32) {
    %c0_i32 = arith.constant 0 : i32
    %c0_i32_0 = arith.constant 0 : i32
    %c0_i32_1 = arith.constant 0 : i32
    return %arg0, %c0_i32, %c0_i32_0 : i32, i32, i32
  }
}

module attributes {stable_mosaic.version = 11 : i64} {
  func.func @_merge_ln_linear_kernel(%arg0: i32, %arg1: memref<16x2x8x8xf32, #tpu.memory_space<vmem>>, %arg2: memref<1x16xf32, #tpu.memory_space<vmem>>, %arg3: memref<1x16xf32, #tpu.memory_space<vmem>>, %arg4: memref<16x8xf32, #tpu.memory_space<vmem>>, %arg5: memref<16x8x8xf32, #tpu.memory_space<vmem>>) attributes {dimension_semantics = [#tpu.dimension_semantics<parallel>], iteration_bounds = array<i64: 1>, scalar_prefetch = 0 : i64, scratch_operands = 0 : i64, tpu.core_type = #tpu.core_type<tc>, window_params = [{transform_indices = @transform_0, window_bounds = array<i64: 16, 2, 8, 8>}, {pipeline_mode = #tpu.pipeline_mode<synchronous>, transform_indices = @transform_1, window_bounds = array<i64: 1, 16>}, {pipeline_mode = #tpu.pipeline_mode<synchronous>, transform_indices = @transform_2, window_bounds = array<i64: 1, 16>}, {pipeline_mode = #tpu.pipeline_mode<synchronous>, transform_indices = @transform_3, window_bounds = array<i64: 16, 8>}, {transform_indices = @transform_4, window_bounds = array<i64: 16, 8, 8>}]} {
    %c0 = arith.constant 0 : index
    %c0_0 = arith.constant 0 : index
    %c0_1 = arith.constant 0 : index
    %c0_2 = arith.constant 0 : index
    %0 = vector.load %arg1[%c0, %c0_0, %c0_1, %c0_2] : memref<16x2x8x8xf32, #tpu.memory_space<vmem>>, vector<16x2x8x8xf32>
    %1 = vector.extract_strided_slice %0 {offsets = [0, 0, 0, 0], sizes = [16, 1, 8, 8], strides = [1, 1, 1, 1]} : vector<16x2x8x8xf32> to vector<16x1x8x8xf32>
    %2 = vector.shape_cast %1 : vector<16x1x8x8xf32> to vector<16x8x8xf32>
    %3 = vector.extract_strided_slice %0 {offsets = [0, 1, 0, 0], sizes = [16, 1, 8, 8], strides = [1, 1, 1, 1]} : vector<16x2x8x8xf32> to vector<16x1x8x8xf32>
    %4 = vector.shape_cast %3 : vector<16x1x8x8xf32> to vector<16x8x8xf32>
    %5 = tpu.concatenate %2, %4 in 2 : vector<16x8x8xf32>, vector<16x8x8xf32> -> vector<16x8x16xf32>
    %cst = arith.constant dense<0.000000e+00> : vector<16x8xf32>
    %6 = vector.multi_reduction <add>, %5, %cst [2] : vector<16x8x16xf32> to vector<16x8xf32>
    %7 = vector.shape_cast %6 : vector<16x8xf32> to vector<16x8x1xf32>
    %cst_3 = arith.constant 1.600000e+01 : f32
    %8 = vector.broadcast %cst_3 : f32 to vector<16x8x1xf32>
    %9 = arith.divf %7, %8 : vector<16x8x1xf32>
    %10 = vector.broadcast %9 : vector<16x8x1xf32> to vector<16x8x16xf32>
    %11 = arith.subf %5, %10 : vector<16x8x16xf32>
    %12 = arith.mulf %11, %11 : vector<16x8x16xf32>
    %cst_4 = arith.constant dense<0.000000e+00> : vector<16x8xf32>
    %13 = vector.multi_reduction <add>, %12, %cst_4 [2] : vector<16x8x16xf32> to vector<16x8xf32>
    %14 = vector.shape_cast %13 : vector<16x8xf32> to vector<16x8x1xf32>
    %cst_5 = arith.constant 1.600000e+01 : f32
    %15 = vector.broadcast %cst_5 : f32 to vector<16x8x1xf32>
    %16 = arith.divf %14, %15 : vector<16x8x1xf32>
    %c0_6 = arith.constant 0 : index
    %c0_7 = arith.constant 0 : index
    %17 = vector.load %arg2[%c0_6, %c0_7] : memref<1x16xf32, #tpu.memory_space<vmem>>, vector<1x16xf32>
    %18 = vector.shape_cast %17 : vector<1x16xf32> to vector<1x1x16xf32>
    %c0_8 = arith.constant 0 : index
    %c0_9 = arith.constant 0 : index
    %19 = vector.load %arg3[%c0_8, %c0_9] : memref<1x16xf32, #tpu.memory_space<vmem>>, vector<1x16xf32>
    %20 = vector.shape_cast %19 : vector<1x16xf32> to vector<1x1x16xf32>
    %cst_10 = arith.constant 9.99999974E-6 : f32
    %21 = vector.broadcast %cst_10 : f32 to vector<16x8x1xf32>
    %22 = arith.addf %16, %21 : vector<16x8x1xf32>
    %23 = math.rsqrt %22 : vector<16x8x1xf32>
    %24 = vector.broadcast %23 : vector<16x8x1xf32> to vector<16x8x16xf32>
    %25 = arith.mulf %11, %24 : vector<16x8x16xf32>
    %26 = vector.broadcast %18 : vector<1x1x16xf32> to vector<16x8x16xf32>
    %27 = arith.mulf %25, %26 : vector<16x8x16xf32>
    %28 = vector.broadcast %20 : vector<1x1x16xf32> to vector<16x8x16xf32>
    %29 = arith.addf %27, %28 : vector<16x8x16xf32>
    %30 = vector.shape_cast %29 : vector<16x8x16xf32> to vector<128x16xf32>
    %c0_11 = arith.constant 0 : index
    %c0_12 = arith.constant 0 : index
    %31 = vector.load %arg4[%c0_11, %c0_12] : memref<16x8xf32, #tpu.memory_space<vmem>>, vector<16x8xf32>
    %cst_13 = arith.constant dense<0.000000e+00> : vector<128x8xf32>
    %32 = tpu.matmul %30, %31, %cst_13 {dimension_numbers = #tpu.dot_dimension_numbers<[1], [0], [0], [1], [0, 0, 1, 1], [], []>} : vector<128x16xf32>, vector<16x8xf32>, vector<128x8xf32> -> vector<128x8xf32>
    %33 = vector.shape_cast %32 : vector<128x8xf32> to vector<16x8x8xf32>
    %c0_14 = arith.constant 0 : index
    %c0_15 = arith.constant 0 : index
    %c0_16 = arith.constant 0 : index
    %34 = vector.load %arg5[%c0_14, %c0_15, %c0_16] : memref<16x8x8xf32, #tpu.memory_space<vmem>>, vector<16x8x8xf32>
    tpu.vector_store %arg5[%c0_14, %c0_15, %c0_16], %33 {strides = array<i32>} : memref<16x8x8xf32, #tpu.memory_space<vmem>>, vector<16x8x8xf32>,
    return
  }
  func.func @transform_0(%arg0: i32) -> (i32, i32, i32, i32) {
    %c0_i32 = arith.constant 0 : i32
    %c0_i32_0 = arith.constant 0 : i32
    %c0_i32_1 = arith.constant 0 : i32
    %c0_i32_2 = arith.constant 0 : i32
    return %arg0, %c0_i32, %c0_i32_0, %c0_i32_1 : i32, i32, i32, i32
  }
  func.func @transform_1(%arg0: i32) -> (i32, i32) {
    %c0_i32 = arith.constant 0 : i32
    %c0_i32_0 = arith.constant 0 : i32
    %c0_i32_1 = arith.constant 0 : i32
    return %c0_i32, %c0_i32_0 : i32, i32
  }
  func.func @transform_2(%arg0: i32) -> (i32, i32) {
    %c0_i32 = arith.constant 0 : i32
    %c0_i32_0 = arith.constant 0 : i32
    %c0_i32_1 = arith.constant 0 : i32
    return %c0_i32, %c0_i32_0 : i32, i32
  }
  func.func @transform_3(%arg0: i32) -> (i32, i32) {
    %c0_i32 = arith.constant 0 : i32
    %c0_i32_0 = arith.constant 0 : i32
    %c0_i32_1 = arith.constant 0 : i32
    return %c0_i32, %c0_i32_0 : i32, i32
  }
  func.func @transform_4(%arg0: i32) -> (i32, i32, i32) {
    %c0_i32 = arith.constant 0 : i32
    %c0_i32_0 = arith.constant 0 : i32
    %c0_i32_1 = arith.constant 0 : i32
    return %arg0, %c0_i32, %c0_i32_0 : i32, i32, i32
  }
}

</mosaic_0001>

<bundles_post_ra>
// kernel: tpu_custom_call.1
= control target key start
LH: loop header
LB: loop body
LE: loop exit
PB: predicated region body
PF: predicated region fallthrough
CT: control target
= control target key end

     0   :  { %s725_s19 = smov 8   ;;  %vm113_vm0 = vcmask 64512   ;;  %vm130_vm1 = vcmask 130048   ;;  %s1456_s0 = inlined_call_operand.vmem [shape: f32[16,2,8,8], index: 0, kind: input, shape index: {}]   ;;  %s1457_s1 = inlined_call_operand.vmem [shape: f32[1,16], index: 1, kind: input, shape index: {}]   ;;  %s1458_s2 = inlined_call_operand.vmem [shape: f32[1,16], index: 2, kind: input, shape index: {}]   ;;  %s1459_s3 = inlined_call_operand.vmem [shape: f32[16,8], index: 3, kind: input, shape index: {}]   ;;  %s1460_s4 = inlined_call_operand.vmem [shape: f32[16,8,8], index: 4, kind: output, shape index: {}]  }
   0x1   :  { %v34_v0 = vld [vmem:[%s1456_s0 + $0x88] sm:$0xff]  ;;  %v36_v2 = vld [vmem:[%s1456_s0 + $0x98] sm:$0xff]  ;;  %v33_v16 = vld [vmem:[%s1456_s0 + $0x80] sm:$0xff] }
   0x2   :  { %v18_v1 = vld [vmem:[%s1456_s0 + $0x8] sm:$0xff]  ;;  %81 = vrot.lane.b32.xlu0 %v34_v0, %s725_s19  ;;  %83 = vrot.lane.b32.xlu2 %v36_v2, %s725_s19  ;;  %v44_v5 = vld [vmem:[%s1456_s0 + $0xd8] sm:$0xff] }
   0x3   :  { %65 = vrot.lane.b32.xlu1 %v18_v1, %s725_s19  ;;  %v42_v3 = vld [vmem:[%s1456_s0 + $0xc8] sm:$0xff]  ;;  %v20_v6 = vld [vmem:[%s1456_s0 + $0x18] sm:$0xff]  ;;  %v17_v17 = vld [vmem:[%s1456_s0] sm:$0xff] }
   0x4   :  { %v26_v4 = vld [vmem:[%s1456_s0 + $0x48] sm:$0xff]  ;;  %v28_v7 = vld [vmem:[%s1456_s0 + $0x58] sm:$0xff]  ;;  %v35_v25 = vld [vmem:[%s1456_s0 + $0x90] sm:$0xff] }
   0x5   :  { %v38_v8 = vld [vmem:[%s1456_s0 + $0xa8] sm:$0xff]  ;;  %v40_v12 = vld [vmem:[%s1456_s0 + $0xb8] sm:$0xff]  ;;  %v41_v27 = vld [vmem:[%s1456_s0 + $0xc0] sm:$0xff] }
   0x6   :  { %v46_v9 = vld [vmem:[%s1456_s0 + $0xe8] sm:$0xff]  ;;  %v48_v13 = vld [vmem:[%s1456_s0 + $0xf8] sm:$0xff]  ;;  %v25_v33 = vld [vmem:[%s1456_s0 + $0x40] sm:$0xff] }
   0x7   :  { %v22_v10 = vld [vmem:[%s1456_s0 + $0x28] sm:$0xff]  ;;  %v24_v14 = vld [vmem:[%s1456_s0 + $0x38] sm:$0xff]  ;;  %v27_v36 = vld [vmem:[%s1456_s0 + $0x50] sm:$0xff] }
   0x8   :  { %v30_v11 = vld [vmem:[%s1456_s0 + $0x68] sm:$0xff]  ;;  %v32_v15 = vld [vmem:[%s1456_s0 + $0x78] sm:$0xff]  ;;  %v19_v37 = vld [vmem:[%s1456_s0 + $0x10] sm:$0xff] }
   0x9   :  { %v43_v45 = vld [vmem:[%s1456_s0 + $0xd0] sm:$0xff]  ;;  %v21_v48 = vld [vmem:[%s1456_s0 + $0x20] sm:$0xff] }
   0xa   :  { %89 = vrot.lane.b32.xlu0 %v42_v3, %s725_s19  ;;  %91 = vrot.lane.b32.xlu2 %v44_v5, %s725_s19  ;;  %v45_v49 = vld [vmem:[%s1456_s0 + $0xe0] sm:$0xff]  ;;  %v47_v59 = vld [vmem:[%s1456_s0 + $0xf0] sm:$0xff] }
   0xb   :  { %73 = vrot.lane.b32.xlu1 %v26_v4, %s725_s19  ;;  %v37_v57 = vld [vmem:[%s1456_s0 + $0xa0] sm:$0xff]  ;;  %v39_v60 = vld [vmem:[%s1456_s0 + $0xb0] sm:$0xff] }
   0xc   :  { %v29_v5 = vld [vmem:[%s1456_s0 + $0x60] sm:$0xff] }
  0x12   :  { %67 = vrot.lane.b32.xlu0 %v20_v6, %s725_s19  ;;  %85 = vrot.lane.b32.xlu2 %v38_v8, %s725_s19 }
  0x13   :  { %75 = vrot.lane.b32.xlu1 %v28_v7, %s725_s19  ;;  %v31_v7 = vld [vmem:[%s1456_s0 + $0x70] sm:$0xff] }
  0x1a   :  { %93 = vrot.lane.b32.xlu0 %v46_v9, %s725_s19  ;;  %77 = vrot.lane.b32.xlu2 %v30_v11, %s725_s19 }
  0x1b   :  { %69 = vrot.lane.b32.xlu1 %v22_v10, %s725_s19 }
  0x22   :  { %87 = vrot.lane.b32.xlu0 %v40_v12, %s725_s19  ;;  %71 = vrot.lane.b32.xlu2 %v24_v14, %s725_s19 }
  0x23   :  { %95 = vrot.lane.b32.xlu1 %v48_v13, %s725_s19  ;;  %v23_v13 = vld [vmem:[%s1456_s0 + $0x30] sm:$0xff] }
  0x2a   :  { %79 = vrot.lane.b32.xlu0 %v32_v15, %s725_s19 }
  0x5c   :  { %v84_v24 = vpop.permute.xlu2 %83 }
  0x5d   :  { %v836_v26 = vsel %vm113_vm0, %v35_v25, %v84_v24 }
  0x5e   :  { %v158_v30 = vsel %vm130_vm1, %v836_v26, 0.0 }
  0x64   :  { %v92_v34 = vpop.permute.xlu2 %91 }
  0x65   :  { %v876_v46 = vsel %vm113_vm0, %v43_v45, %v92_v34 }
  0x66   :  { %v170_v52 = vsel %vm130_vm1, %v876_v46, 0.0 }
  0x6c   :  { %v86_v47 = vpop.permute.xlu2 %85 }
  0x6d   :  { %v900_v58 = vsel %vm113_vm0, %v37_v57, %v86_v47 }
  0x6e   :  { %v161_v0 = vsel %vm130_vm1, %v900_v58, 0.0 }
  0x74   :  { %v82_v18 = vpop.permute.xlu0 %81  ;;  %v78_v61 = vpop.permute.xlu2 %77 }
  0x75   :  { %v66_v19 = vpop.permute.xlu1 %65  ;;  %v823_v20 = vsel %vm113_vm0, %v33_v16, %v82_v18  ;;  %v924_v6 = vsel %vm113_vm0, %v29_v5, %v78_v61  ;;  %v726_v16 = vmov 16.0  }
  0x76   :  { %v826_v21 = vsel %vm113_vm0, %v17_v17, %v66_v19  ;;  %v155_v22 = vsel %vm130_vm1, %v823_v20, 0.0  ;;  %v149_v9 = vsel %vm130_vm1, %v924_v6, 0.0  ;;  %691 = vrcp.f32 %v726_v16 }
  0x77   :  { %v131_v23 = vsel %vm130_vm1, %v826_v21, 0.0  ;;  %156 = vadd.xlane.f32.xlu1 %v155_v22 }
  0x78   :  { %132 = vadd.xlane.f32.xlu0 %v131_v23 }
  0x7c   :  { %v90_v28 = vpop.permute.xlu0 %89  ;;  %v72_v12 = vpop.permute.xlu2 %71 }
  0x7d   :  { %v74_v29 = vpop.permute.xlu1 %73  ;;  %v844_v31 = vsel %vm113_vm0, %v41_v27, %v90_v28  ;;  %v940_v14 = vsel %vm113_vm0, %v23_v13, %v72_v12  ;;  %v692_v17 = vpop.eup %691 }
  0x7e   :  { %v167_v32 = vsel %vm130_vm1, %v844_v31, 0.0  ;;  %v852_v35 = vsel %vm113_vm0, %v25_v33, %v74_v29  ;;  %v140_v15 = vsel %vm130_vm1, %v940_v14, 0.0  ;;  %v180_v18 = vmul.f32 16.0, %v692_v17 }
  0x7f   :  { %168 = vadd.xlane.f32.xlu2 %v167_v32  ;;  %159 = vadd.xlane.f32.xlu1 %v158_v30  ;;  %v143_v40 = vsel %vm130_vm1, %v852_v35, 0.0  ;;  %vm184_vm2 = vweird.f32 %v692_v17 }
  0x80   :  { %v181_v19 = vsub.f32 1.0, %v180_v18 }
  0x82   :  { %v182_v22 = vmul.f32 %v692_v17, %v181_v19 }
  0x84   :  { %v68_v38 = vpop.permute.xlu0 %67  ;;  %v183_v23 = vadd.f32 %v692_v17, %v182_v22 }
  0x85   :  { %v76_v39 = vpop.permute.xlu1 %75  ;;  %v866_v42 = vsel %vm113_vm0, %v19_v37, %v68_v38 }
  0x86   :  { %v863_v41 = vsel %vm113_vm0, %v27_v36, %v76_v39  ;;  %v134_v44 = vsel %vm130_vm1, %v866_v42, 0.0  ;;  %v944_v24 = vsel %vm184_vm2, %v692_v17, %v183_v23 }
  0x87   :  { %v146_v43 = vsel %vm130_vm1, %v863_v41, 0.0  ;;  %144 = vadd.xlane.f32.xlu2 %v143_v40  ;;  %135 = vadd.xlane.f32.xlu0 %v134_v44 }
  0x88   :  { %147 = vadd.xlane.f32.xlu1 %v146_v43 }
  0x8c   :  { %v94_v50 = vpop.permute.xlu0 %93 }
  0x8d   :  { %v70_v51 = vpop.permute.xlu1 %69  ;;  %v890_v54 = vsel %vm113_vm0, %v45_v49, %v94_v50 }
  0x8e   :  { %v887_v53 = vsel %vm113_vm0, %v21_v48, %v70_v51  ;;  %v173_v56 = vsel %vm130_vm1, %v890_v54, 0.0 }
  0x8f   :  { %v137_v55 = vsel %vm130_vm1, %v887_v53, 0.0  ;;  %171 = vadd.xlane.f32.xlu2 %v170_v52  ;;  %174 = vadd.xlane.f32.xlu0 %v173_v56 }
  0x90   :  { %138 = vadd.xlane.f32.xlu1 %v137_v55 }
  0x94   :  { %v88_v62 = vpop.permute.xlu0 %87 }
  0x95   :  { %v96_v63 = vpop.permute.xlu1 %95  ;;  %v914_v2 = vsel %vm113_vm0, %v39_v60, %v88_v62 }
  0x96   :  { %v911_v1 = vsel %vm113_vm0, %v47_v59, %v96_v63  ;;  %v164_v4 = vsel %vm130_vm1, %v914_v2, 0.0 }
  0x97   :  { %v176_v3 = vsel %vm130_vm1, %v911_v1, 0.0  ;;  %162 = vadd.xlane.f32.xlu2 %v161_v0  ;;  %165 = vadd.xlane.f32.xlu0 %v164_v4 }
  0x98   :  { %177 = vadd.xlane.f32.xlu1 %v176_v3 }
  0x9c   :  { %v80_v8 = vpop.permute.xlu0 %79 }
  0x9d   :  { %v932_v10 = vsel %vm113_vm0, %v31_v7, %v80_v8 }
  0x9e   :  { %v152_v11 = vsel %vm130_vm1, %v932_v10, 0.0 }
  0x9f   :  { %150 = vadd.xlane.f32.xlu2 %v149_v9  ;;  %153 = vadd.xlane.f32.xlu0 %v152_v11 }
  0xa7   :  { %141 = vadd.xlane.f32.xlu2 %v140_v15 }
  0xea   :  { %v157_v25 = vpop.xlane.xlu1 %156 }
  0xeb   :  { %v133_v27 = vpop.xlane.xlu0 %132  ;;  %v194_v28 = vmul.f32 %v944_v24, %v157_v25 }
  0xec   :  { %v186_v29 = vmul.f32 %v944_v24, %v133_v27 }
  0xed   :  { %v949_v30 = vsub.f32 %v823_v20, %v194_v28 }
  0xee   :  { %v952_v32 = vsub.f32 %v826_v21, %v186_v29 }
  0xef   :  { %v226_v33 = vmul.f32 %v949_v30, %v949_v30 }
  0xf0   :  { %v218_v34 = vmul.f32 %v952_v32, %v952_v32 }
  0xf1   :  { %v258_v36 = vsel %vm130_vm1, %v226_v33, 0.0 }
  0xf2   :  { %v234_v37 = vsel %vm130_vm1, %v218_v34, 0.0  ;;  %v169_v38 = vpop.xlane.xlu2 %168  ;;  %259 = vadd.xlane.f32.xlu1 %v258_v36  ;;  %v160_v39 = vpop.xlane.xlu1 %159 }
  0xf3   :  { %235 = vadd.xlane.f32.xlu0 %v234_v37  ;;  %v198_v20 = vmul.f32 %v944_v24, %v169_v38  ;;  %v195_v21 = vmul.f32 %v944_v24, %v160_v39 }
  0xf5   :  { %v962_v40 = vsub.f32 %v844_v31, %v198_v20  ;;  %v968_v44 = vsub.f32 %v836_v26, %v195_v21 }
  0xf7   :  { %v230_v43 = vmul.f32 %v962_v40, %v962_v40  ;;  %v227_v52 = vmul.f32 %v968_v44, %v968_v44 }
  0xf9   :  { %v270_v45 = vsel %vm130_vm1, %v230_v43, 0.0  ;;  %v261_v59 = vsel %vm130_vm1, %v227_v52, 0.0 }
  0xfa   :  { %271 = vadd.xlane.f32.xlu2 %v270_v45  ;;  %v145_v47 = vpop.xlane.xlu2 %144  ;;  %v136_v50 = vpop.xlane.xlu0 %135 }
  0xfb   :  { %v148_v48 = vpop.xlane.xlu1 %147  ;;  %v190_v49 = vmul.f32 %v944_v24, %v145_v47  ;;  %v187_v55 = vmul.f32 %v944_v24, %v136_v50 }
  0xfc   :  { %v191_v31 = vmul.f32 %v944_v24, %v148_v48 }
  0xfd   :  { %v973_v51 = vsub.f32 %v852_v35, %v190_v49  ;;  %v987_v35 = vsub.f32 %v866_v42, %v187_v55 }
  0xfe   :  { %v982_v56 = vsub.f32 %v863_v41, %v191_v31  ;;  %v531_v31 = vld [vmem:[%s1459_s3 + $0x8] sm:$0xff] }
  0xff   :  { %v222_v26 = vmul.f32 %v973_v51, %v973_v51  ;;  %v219_v42 = vmul.f32 %v987_v35, %v987_v35  ;;  %594 = vmatpush.msra.mxu0 %v531_v31  ;;  %682 = vmatpush.msra.mxu2 %v531_v31 }
 0x100   :  { %v223_v3 = vmul.f32 %v982_v56, %v982_v56  ;;  %683 = vmatpush.msra.mxu3 %v531_v31  ;;  %681 = vmatpush.msra.mxu1 %v531_v31 }
 0x101   :  { %v246_v57 = vsel %vm130_vm1, %v222_v26, 0.0  ;;  %v237_v13 = vsel %vm130_vm1, %v219_v42, 0.0 }
 0x102   :  { %v172_v60 = vpop.xlane.xlu2 %171  ;;  %247 = vadd.xlane.f32.xlu1 %v246_v57  ;;  %262 = vadd.xlane.f32.xlu2 %v261_v59  ;;  %v175_v63 = vpop.xlane.xlu0 %174  ;;  %v249_v8 = vsel %vm130_vm1, %v223_v3, 0.0 }
 0x103   :  { %v139_v61 = vpop.xlane.xlu1 %138  ;;  %v199_v62 = vmul.f32 %v944_v24, %v172_v60  ;;  %v200_v4 = vmul.f32 %v944_v24, %v175_v63 }
 0x104   :  { %v188_v41 = vmul.f32 %v944_v24, %v139_v61 }
 0x105   :  { %v991_v0 = vsub.f32 %v876_v46, %v199_v62  ;;  %v1007_v9 = vsub.f32 %v890_v54, %v200_v4 }
 0x106   :  { %v1002_v7 = vsub.f32 %v887_v53, %v188_v41 }
 0x107   :  { %v231_v5 = vmul.f32 %v991_v0, %v991_v0  ;;  %v232_v19 = vmul.f32 %v1007_v9, %v1007_v9 }
 0x108   :  { %v220_v18 = vmul.f32 %v1002_v7, %v1002_v7 }
 0x109   :  { %v273_v46 = vsel %vm130_vm1, %v231_v5, 0.0  ;;  %v276_v29 = vsel %vm130_vm1, %v232_v19, 0.0 }
 0x10a   :  { %v163_v11 = vpop.xlane.xlu2 %162  ;;  %250 = vadd.xlane.f32.xlu2 %v249_v8  ;;  %274 = vadd.xlane.f32.xlu0 %v273_v46  ;;  %v166_v16 = vpop.xlane.xlu0 %165  ;;  %v240_v25 = vsel %vm130_vm1, %v220_v18, 0.0 }
 0x10b   :  { %v178_v12 = vpop.xlane.xlu1 %177  ;;  %v196_v15 = vmul.f32 %v944_v24, %v163_v11  ;;  %238 = vadd.xlane.f32.xlu1 %v237_v13  ;;  %v197_v54 = vmul.f32 %v944_v24, %v166_v16 }
 0x10c   :  { %v201_v17 = vmul.f32 %v944_v24, %v178_v12 }
 0x10d   :  { %v1012_v53 = vsub.f32 %v900_v58, %v196_v15  ;;  %v1028_v27 = vsub.f32 %v914_v2, %v197_v54 }
 0x10e   :  { %v1023_v23 = vsub.f32 %v911_v1, %v201_v17 }
 0x10f   :  { %v228_v22 = vmul.f32 %v1012_v53, %v1012_v53  ;;  %v229_v2 = vmul.f32 %v1028_v27, %v1028_v27 }
 0x110   :  { %v233_v1 = vmul.f32 %v1023_v23, %v1023_v23 }
 0x111   :  { %v264_v58 = vsel %vm130_vm1, %v228_v22, 0.0  ;;  %v267_v43 = vsel %vm130_vm1, %v229_v2, 0.0 }
 0x112   :  { %v151_v28 = vpop.xlane.xlu2 %150  ;;  %241 = vadd.xlane.f32.xlu2 %v240_v25  ;;  %265 = vadd.xlane.f32.xlu0 %v264_v58  ;;  %v154_v34 = vpop.xlane.xlu0 %153  ;;  %v279_v39 = vsel %vm130_vm1, %v233_v1, 0.0 }
 0x113   :  { %v192_v33 = vmul.f32 %v944_v24, %v151_v28  ;;  %277 = vadd.xlane.f32.xlu1 %v276_v29  ;;  %v193_v37 = vmul.f32 %v944_v24, %v154_v34  ;;  %v1077_v29 = vld [vmem:[%s1457_s1] ss:$0 sm:$0xff] }
 0x115   :  { %v1033_v36 = vsub.f32 %v924_v6, %v192_v33  ;;  %v1045_v21 = vsub.f32 %v932_v10, %v193_v37  ;;  %v1083_v37 = vld [vmem:[%s1458_s2] ss:$0 sm:$0xff] }
 0x117   :  { %v224_v38 = vmul.f32 %v1033_v36, %v1033_v36  ;;  %v225_v48 = vmul.f32 %v1045_v21, %v1045_v21 }
 0x119   :  { %v252_v20 = vsel %vm130_vm1, %v224_v38, 0.0  ;;  %v255_v50 = vsel %vm130_vm1, %v225_v48, 0.0 }
 0x11a   :  { %v142_v6 = vpop.xlane.xlu2 %141  ;;  %280 = vadd.xlane.f32.xlu2 %v279_v39  ;;  %253 = vadd.xlane.f32.xlu0 %v252_v20 }
 0x11b   :  { %v189_v45 = vmul.f32 %v944_v24, %v142_v6  ;;  %268 = vadd.xlane.f32.xlu1 %v267_v43 }
 0x11d   :  { %v1050_v47 = vsub.f32 %v940_v14, %v189_v45  ;;  %v530_v14 = vld [vmem:[%s1459_s3] sm:$0xff] }
 0x11e   :  { %595 = vmatpush.msra.mxu0 %v530_v14  ;;  %685 = vmatpush.msra.mxu2 %v530_v14 }
 0x11f   :  { %v221_v49 = vmul.f32 %v1050_v47, %v1050_v47  ;;  %686 = vmatpush.msra.mxu3 %v530_v14  ;;  %684 = vmatpush.msra.mxu1 %v530_v14 }
 0x121   :  { %v243_v10 = vsel %vm130_vm1, %v221_v49, 0.0 }
 0x122   :  { %244 = vadd.xlane.f32.xlu0 %v243_v10 }
 0x123   :  { %256 = vadd.xlane.f32.xlu1 %v255_v50 }
 0x165   :  { %v260_v52 = vpop.xlane.xlu1 %259 }
 0x166   :  { %v236_v55 = vpop.xlane.xlu0 %235  ;;  %v290_v26 = vmul.f32 %v260_v52, %v944_v24 }
 0x167   :  { %v282_v57 = vmul.f32 %v236_v55, %v944_v24 }
 0x168   :  { %v308_v59 = vadd.f32 1e-05, %v290_v26 }
 0x169   :  { %v300_v60 = vadd.f32 1e-05, %v282_v57 }
 0x16a   :  { %693 = vrsqrt.f32 %v308_v59  ;;  %vm402_vm5 = vweird.f32 %v308_v59 }
 0x16b   :  { %695 = vrsqrt.f32 %v300_v60  ;;  %vm322_vm7 = vweird.f32 %v300_v60 }
 0x16d   :  { %v272_v61 = vpop.xlane.xlu2 %271 }
 0x16e   :  { %v294_v62 = vmul.f32 %v272_v61, %v944_v24 }
 0x170   :  { %v694_v63 = vpop.eup %693  ;;  %v312_v41 = vadd.f32 1e-05, %v294_v62 }
 0x171   :  { %v696_v3 = vpop.eup %695  ;;  %v397_v4 = vmul.f32 %v694_v63, %v308_v59  ;;  %vm403_vm3 = vweird.f32 %v694_v63 }
 0x172   :  { %v317_v42 = vmul.f32 %v696_v3, %v300_v60  ;;  %697 = vrsqrt.f32 %v312_v41  ;;  %vm323_vm4 = vweird.f32 %v696_v3  ;;  %vm404_vm6 = vmor %vm402_vm5, %vm403_vm3  ;;  %vm442_vm10 = vweird.f32 %v312_v41 }
 0x173   :  { %v398_v5 = vmul.f32 %v694_v63, %v397_v4  ;;  %vm324_vm8 = vmor %vm322_vm7, %vm323_vm4 }
 0x174   :  { %v318_v8 = vmul.f32 %v696_v3, %v317_v42 }
 0x175   :  { %v399_v46 = vmul.f32 0.5, %v398_v5  ;;  %v263_v11 = vpop.xlane.xlu2 %262  ;;  %v248_v12 = vpop.xlane.xlu1 %247 }
 0x176   :  { %v319_v13 = vmul.f32 0.5, %v318_v8  ;;  %v291_v15 = vmul.f32 %v263_v11, %v944_v24  ;;  %v286_v16 = vmul.f32 %v248_v12, %v944_v24 }
 0x177   :  { %v400_v17 = vsub.f32 1.5, %v399_v46 }
 0x178   :  { %v698_v18 = vpop.eup %697  ;;  %v320_v54 = vsub.f32 1.5, %v319_v13  ;;  %v1069_v19 = vadd.f32 1e-05, %v291_v15  ;;  %v1071_v22 = vadd.f32 1e-05, %v286_v16 }
 0x179   :  { %v401_v25 = vmul.f32 %v694_v63, %v400_v17  ;;  %v437_v58 = vmul.f32 %v698_v18, %v312_v41  ;;  %vm443_vm9 = vweird.f32 %v698_v18 }
 0x17a   :  { %v321_v28 = vmul.f32 %v696_v3, %v320_v54  ;;  %699 = vrsqrt.f32 %v1069_v19  ;;  %vm1105_vm11 = vmor %vm442_vm10, %vm443_vm9  ;;  %vm412_vm12 = vweird.f32 %v1069_v19  ;;  %vm362_vm15 = vweird.f32 %v1071_v22 }
 0x17b   :  { %v405_v33 = vsel %vm404_vm6, %v694_v63, %v401_v25  ;;  %v438_v34 = vmul.f32 %v698_v18, %v437_v58  ;;  %701 = vrsqrt.f32 %v1071_v22 }
 0x17c   :  { %v325_v1 = vsel %vm324_vm8, %v696_v3, %v321_v28  ;;  %v484_v2 = vmul.f32 %v405_v33, %v949_v30 }
 0x17d   :  { %v439_v38 = vmul.f32 0.5, %v438_v34  ;;  %v251_v39 = vpop.xlane.xlu2 %250  ;;  %v275_v20 = vpop.xlane.xlu0 %274  ;;  %v476_v6 = vmul.f32 %v325_v1, %v952_v32 }
 0x17e   :  { %v287_v43 = vmul.f32 %v251_v39, %v944_v24  ;;  %v239_v45 = vpop.xlane.xlu1 %238  ;;  %v295_v48 = vmul.f32 %v275_v20, %v944_v24  ;;  %v503_v49 = vmul.f32 %v1077_v29, %v484_v2 }
 0x17f   :  { %v440_v10 = vsub.f32 1.5, %v439_v38  ;;  %v283_v50 = vmul.f32 %v239_v45, %v944_v24  ;;  %v495_v52 = vmul.f32 %v1077_v29, %v476_v6 }
 0x180   :  { %v1091_v31 = vpop.eup %699  ;;  %v1093_v14 = vadd.f32 1e-05, %v287_v43  ;;  %v1095_v30 = vadd.f32 1e-05, %v295_v48  ;;  %v522_v32 = vadd.f32 %v1083_v37, %v503_v49 }
 0x181   :  { %v1099_v55 = vpop.eup %701  ;;  %v441_v26 = vmul.f32 %v698_v18, %v440_v10  ;;  %v407_v57 = vmul.f32 %v1091_v31, %v1069_v19  ;;  %v1103_v59 = vadd.f32 1e-05, %v283_v50  ;;  %v514_v3 = vadd.f32 %v1083_v37, %v495_v52 }
 0x182   :  { %v357_v61 = vmul.f32 %v1099_v55, %v1071_v22  ;;  %703 = vrsqrt.f32 %v1093_v14  ;;  %673 = vmatmul.msk.f32.vlgmr.msra.gmra.mxu2 %vm130_vm1, %v522_v32  ;;  %vm363_vm13 = vweird.f32 %v1099_v55  ;;  %vm413_vm14 = vweird.f32 %v1091_v31 }
 0x183   :  { %v445_v62 = vsel %vm1105_vm11, %v698_v18, %v441_v26  ;;  %v408_v63 = vmul.f32 %v1091_v31, %v407_v57  ;;  %705 = vrsqrt.f32 %v1103_v59  ;;  %665 = vmatmul.msk.f32.vlgmr.msra.gmra.mxu0 %vm130_vm1, %v514_v3  ;;  %vm1156_vm2 = vmor %vm362_vm15, %vm363_vm13  ;;  %vm372_vm3 = vweird.f32 %v1093_v14 }
 0x184   :  { %v358_v41 = vmul.f32 %v1099_v55, %v357_v61  ;;  %707 = vrsqrt.f32 %v1095_v30  ;;  %v488_v13 = vmul.f32 %v445_v62, %v962_v40  ;;  %vm1167_vm4 = vmor %vm412_vm12, %vm413_vm14  ;;  %vm332_vm5 = vweird.f32 %v1103_v59 }
 0x185   :  { %v409_v4 = vmul.f32 0.5, %v408_v63  ;;  %v242_v42 = vpop.xlane.xlu2 %241  ;;  %v266_v5 = vpop.xlane.xlu0 %265  ;;  %vm452_vm8 = vweird.f32 %v1095_v30 }
 0x186   :  { %v359_v8 = vmul.f32 0.5, %v358_v41  ;;  %v284_v46 = vmul.f32 %v242_v42, %v944_v24  ;;  %v278_v11 = vpop.xlane.xlu1 %277  ;;  %v292_v12 = vmul.f32 %v266_v5, %v944_v24  ;;  %v507_v1 = vmul.f32 %v1077_v29, %v488_v13 }
 0x187   :  { %v296_v15 = vmul.f32 %v278_v11, %v944_v24  ;;  %v410_v17 = vsub.f32 1.5, %v409_v4 }
 0x188   :  { %v1125_v16 = vpop.eup %703  ;;  %v360_v18 = vsub.f32 1.5, %v359_v8  ;;  %v1127_v54 = vadd.f32 1e-05, %v284_v46  ;;  %v1135_v33 = vadd.f32 1e-05, %v292_v12  ;;  %v526_v52 = vadd.f32 %v1083_v37, %v507_v1 }
 0x189   :  { %v1129_v25 = vpop.eup %705  ;;  %v367_v58 = vmul.f32 %v1125_v16, %v1093_v14  ;;  %v1133_v28 = vadd.f32 1e-05, %v296_v15  ;;  %v411_v20 = vmul.f32 %v1091_v31, %v410_v17  ;;  %vm373_vm6 = vweird.f32 %v1125_v16 }
 0x18a   :  { %v1137_v34 = vpop.eup %707  ;;  %v327_v40 = vmul.f32 %v1129_v25, %v1103_v59  ;;  %709 = vrsqrt.f32 %v1127_v54  ;;  %v361_v2 = vmul.f32 %v1099_v55, %v360_v18  ;;  %677 = vmatmul.msk.f32.vlgmr.msra.gmra.mxu3 %vm130_vm1, %v526_v52  ;;  %vm333_vm7 = vweird.f32 %v1129_v25  ;;  %vm1214_vm11 = vmor %vm372_vm3, %vm373_vm6 }
 0x18b   :  { %v368_v38 = vmul.f32 %v1125_v16, %v367_v58  ;;  %v447_v39 = vmul.f32 %v1137_v34, %v1095_v30  ;;  %711 = vrsqrt.f32 %v1133_v28  ;;  %v415_v63 = vsel %vm1167_vm4, %v1091_v31, %v411_v20  ;;  %vm1235_vm15 = vmor %vm332_vm5, %vm333_vm7 }
 0x18c   :  { %v328_v6 = vmul.f32 %v1129_v25, %v327_v40  ;;  %713 = vrsqrt.f32 %v1135_v33  ;;  %v365_v57 = vsel %vm1156_vm2, %v1099_v55, %v361_v2  ;;  %vm453_vm9 = vweird.f32 %v1137_v34 }
 0x18d   :  { %v369_v43 = vmul.f32 0.5, %v368_v38  ;;  %v448_v45 = vmul.f32 %v1137_v34, %v447_v39  ;;  %v281_v48 = vpop.xlane.xlu2 %280  ;;  %v254_v49 = vpop.xlane.xlu0 %253  ;;  %v480_v8 = vmul.f32 %v365_v57, %v973_v51  ;;  %v485_v13 = vmul.f32 %v415_v63, %v968_v44  ;;  %vm1267_vm4 = vmor %vm452_vm8, %vm453_vm9 }
 0x18e   :  { %v329_v50 = vmul.f32 0.5, %v328_v6  ;;  %v297_v32 = vmul.f32 %v281_v48, %v944_v24  ;;  %v269_v26 = vpop.xlane.xlu1 %268  ;;  %v288_v4 = vmul.f32 %v254_v49, %v944_v24  ;;  %vm342_vm10 = vweird.f32 %v1127_v54 }
 0x18f   :  { %v370_v60 = vsub.f32 1.5, %v369_v43  ;;  %v293_v61 = vmul.f32 %v269_v26, %v944_v24  ;;  %v449_v41 = vmul.f32 0.5, %v448_v45  ;;  %vm422_vm13 = vweird.f32 %v1135_v33 }
 0x190   :  { %v1176_v62 = vpop.eup %709  ;;  %v330_v19 = vsub.f32 1.5, %v329_v50  ;;  %v1182_v3 = vadd.f32 1e-05, %v297_v32  ;;  %vm462_vm14 = vweird.f32 %v1133_v28  ;;  %v1228_v1 = vadd.f32 1e-05, %v288_v4 }
 0x191   :  { %v337_v55 = vmul.f32 %v1176_v62, %v1127_v54  ;;  %v1189_v42 = vpop.eup %711  ;;  %v1192_v5 = vmul.f32 %v1125_v16, %v370_v60  ;;  %v1195_v31 = vadd.f32 1e-05, %v293_v61  ;;  %v450_v17 = vsub.f32 1.5, %v449_v41 }
 0x192   :  { %715 = vrsqrt.f32 %v1182_v3  ;;  %v1198_v46 = vpop.eup %713  ;;  %v457_v12 = vmul.f32 %v1189_v42, %v1133_v28  ;;  %v331_v15 = vmul.f32 %v1129_v25, %v330_v19  ;;  %vm343_vm12 = vweird.f32 %v1176_v62 }
 0x193   :  { %v338_v11 = vmul.f32 %v1176_v62, %v337_v55  ;;  %v417_v51 = vmul.f32 %v1198_v46, %v1135_v33  ;;  %717 = vrsqrt.f32 %v1195_v31  ;;  %v375_v40 = vsel %vm1214_vm11, %v1125_v16, %v1192_v5  ;;  %vm1284_vm5 = vmor %vm342_vm10, %vm343_vm12 }
 0x194   :  { %v458_v44 = vmul.f32 %v1189_v42, %v457_v12  ;;  %v499_v2 = vmul.f32 %v1077_v29, %v480_v8  ;;  %v504_v16 = vmul.f32 %v1077_v29, %v485_v13  ;;  %v335_v49 = vsel %vm1235_vm15, %v1129_v25, %v331_v15 }
 0x195   :  { %v339_v58 = vmul.f32 0.5, %v338_v11  ;;  %v418_v14 = vmul.f32 %v1198_v46, %v417_v51  ;;  %v245_v45 = vpop.xlane.xlu0 %244  ;;  %719 = vrsqrt.f32 %v1228_v1  ;;  %v451_v50 = vmul.f32 %v1137_v34, %v450_v17 }
 0x196   :  { %v257_v38 = vpop.xlane.xlu1 %256  ;;  %v459_v6 = vmul.f32 0.5, %v458_v44  ;;  %v518_v59 = vadd.f32 %v1083_v37, %v499_v2  ;;  %v523_v57 = vadd.f32 %v1083_v37, %v504_v16  ;;  %v285_v25 = vmul.f32 %v245_v45, %v944_v24 }
 0x197   :  { %v340_v20 = vsub.f32 1.5, %v339_v58  ;;  %v289_v43 = vmul.f32 %v257_v38, %v944_v24  ;;  %v419_v10 = vmul.f32 0.5, %v418_v14  ;;  %vm463_vm2 = vweird.f32 %v1189_v42 }
 0x198   :  { %v1241_v48 = vpop.eup %715  ;;  %v460_v32 = vsub.f32 1.5, %v459_v6  ;;  %669 = vmatmul.msk.f32.vlgmr.msra.gmra.mxu1 %vm130_vm1, %v518_v59  ;;  %vm423_vm3 = vweird.f32 %v1198_v46  ;;  %v477_v19 = vmul.f32 %v335_v49, %v987_v35  ;;  %674 = vmatmul.msk.f32.gmra.mxu2 %vm130_vm1, %v523_v57  ;;  %v455_v35 = vsel %vm1267_vm4, %v1137_v34, %v451_v50  ;;  %vm1309_vm8 = vmor %vm462_vm14, %vm463_vm2 }
 0x199   :  { %v341_v52 = vmul.f32 %v1176_v62, %v340_v20  ;;  %v467_v26 = vmul.f32 %v1241_v48, %v1182_v3  ;;  %v420_v22 = vsub.f32 1.5, %v419_v10  ;;  %v1254_v60 = vadd.f32 1e-05, %v289_v43  ;;  %v1257_v61 = vpop.eup %717  ;;  %vm1298_vm7 = vmor %vm422_vm13, %vm423_vm3 }
 0x19a   :  { %v461_v24 = vmul.f32 %v1189_v42, %v460_v32  ;;  %v427_v4 = vmul.f32 %v1257_v61, %v1195_v31  ;;  %vm432_vm6 = vweird.f32 %v1195_v31  ;;  %v1289_v8 = vadd.f32 1e-05, %v285_v25 }
 0x19b   :  { %v468_v63 = vmul.f32 %v1241_v48, %v467_v26  ;;  %v421_v55 = vmul.f32 %v1198_v46, %v420_v22  ;;  %721 = vrsqrt.f32 %v1254_v60  ;;  %v720_v11 = vpop.eup %719  ;;  %v345_v12 = vsel %vm1284_vm5, %v1176_v62, %v341_v52 }
 0x19c   :  { %v428_v34 = vmul.f32 %v1257_v61, %v427_v4  ;;  %v496_v13 = vmul.f32 %v1077_v29, %v477_v19  ;;  %v481_v15 = vmul.f32 %v375_v40, %v982_v56  ;;  %v377_v51 = vmul.f32 %v720_v11, %v1228_v1 }
 0x19d   :  { %v469_v5 = vmul.f32 0.5, %v468_v63  ;;  %v425_v33 = vsel %vm1298_vm7, %v1198_v46, %v421_v55  ;;  %723 = vrsqrt.f32 %v1289_v8  ;;  %v465_v56 = vsel %vm1309_vm8, %v1189_v42, %v461_v24 }
 0x19e   :  { %v429_v18 = vmul.f32 0.5, %v428_v34  ;;  %v515_v28 = vadd.f32 %v1083_v37, %v496_v13  ;;  %v500_v58 = vmul.f32 %v1077_v29, %v481_v15  ;;  %vm473_vm9 = vweird.f32 %v1241_v48 }
 0x19f   :  { %v470_v17 = vsub.f32 1.5, %v469_v5  ;;  %v378_v44 = vmul.f32 %v720_v11, %v377_v51  ;;  %v489_v40 = vmul.f32 %v455_v35, %v991_v0  ;;  %v478_v46 = vmul.f32 %v345_v12, %v1002_v7 }
 0x1a0   :  { %v430_v2 = vsub.f32 1.5, %v429_v18  ;;  %vm433_vm10 = vweird.f32 %v1257_v61  ;;  %666 = vmatmul.msk.f32.gmra.mxu0 %vm130_vm1, %v515_v28  ;;  %v519_v42 = vadd.f32 %v1083_v37, %v500_v58  ;;  %v486_v38 = vmul.f32 %v425_v33, %v1012_v53 }
 0x1a1   :  { %v722_v14 = vpop.eup %721  ;;  %v471_v39 = vmul.f32 %v1241_v48, %v470_v17  ;;  %v379_v20 = vmul.f32 0.5, %v378_v44  ;;  %v490_v16 = vmul.f32 %v465_v56, %v1007_v9  ;;  %v508_v7 = vmul.f32 %v1077_v29, %v489_v40  ;;  %vm1343_vm12 = vmor %vm432_vm6, %vm433_vm10 }
 0x1a2   :  { %v387_v6 = vmul.f32 %v722_v14, %v1254_v60  ;;  %v431_v0 = vmul.f32 %v1257_v61, %v430_v2  ;;  %670 = vmatmul.msk.f32.gmra.mxu1 %vm130_vm1, %v519_v42  ;;  %v497_v43 = vmul.f32 %v1077_v29, %v478_v46  ;;  %v505_v45 = vmul.f32 %v1077_v29, %v486_v38 }
 0x1a3   :  { %v724_v49 = vpop.eup %723  ;;  %vm472_vm11 = vweird.f32 %v1182_v3  ;;  %v380_v9 = vsub.f32 1.5, %v379_v20  ;;  %vm383_vm13 = vweird.f32 %v720_v11  ;;  %vm382_vm14 = vweird.f32 %v1228_v1 }
 0x1a4   :  { %v388_v10 = vmul.f32 %v722_v14, %v387_v6  ;;  %v435_v59 = vsel %vm1343_vm12, %v1257_v61, %v431_v0  ;;  %v347_v50 = vmul.f32 %v724_v49, %v1289_v8  ;;  %v527_v3 = vadd.f32 %v1083_v37, %v508_v7  ;;  %vm1355_vm15 = vmor %vm472_vm11, %vm473_vm9 }
 0x1a5   :  { %v381_v52 = vmul.f32 %v720_v11, %v380_v9  ;;  %v516_v26 = vadd.f32 %v1083_v37, %v497_v43  ;;  %v524_v22 = vadd.f32 %v1083_v37, %v505_v45  ;;  %v475_v1 = vsel %vm1355_vm15, %v1241_v48, %v471_v39  ;;  %vm384_vm2 = vmor %vm382_vm14, %vm383_vm13 }
 0x1a6   :  { %v389_v32 = vmul.f32 0.5, %v388_v10  ;;  %v348_v57 = vmul.f32 %v724_v49, %v347_v50  ;;  %678 = vmatmul.msk.f32.gmra.mxu3 %vm130_vm1, %v527_v3  ;;  %v509_v25 = vmul.f32 %v1077_v29, %v490_v16  ;;  %v487_v61 = vmul.f32 %v435_v59, %v1028_v27 }
 0x1a7   :  { %v385_v63 = vsel %vm384_vm2, %v720_v11, %v381_v52  ;;  %vm393_vm3 = vweird.f32 %v722_v14  ;;  %675 = vmatmul.msk.f32.gmra.mxu2 %vm130_vm1, %v524_v22  ;;  %vm392_vm4 = vweird.f32 %v1254_v60  ;;  %v491_v4 = vmul.f32 %v475_v1, %v1023_v23 }
 0x1a8   :  { %v390_v19 = vsub.f32 1.5, %v389_v32  ;;  %v349_v41 = vmul.f32 0.5, %v348_v57  ;;  %667 = vmatmul.msk.f32.gmra.mxu0 %vm130_vm1, %v516_v26  ;;  %v482_v24 = vmul.f32 %v385_v63, %v1033_v36  ;;  %v506_v48 = vmul.f32 %v1077_v29, %v487_v61  ;;  %vm394_vm5 = vmor %vm392_vm4, %vm393_vm3 }
 0x1a9   :  { %vm353_vm6 = vweird.f32 %v724_v49  ;;  %v528_v27 = vadd.f32 %v1083_v37, %v509_v25  ;;  %vm352_vm7 = vweird.f32 %v1289_v8  ;;  %v510_v23 = vmul.f32 %v1077_v29, %v491_v4 }
 0x1aa   :  { %v391_v55 = vmul.f32 %v722_v14, %v390_v19  ;;  %v350_v35 = vsub.f32 1.5, %v349_v41  ;;  %v501_v30 = vmul.f32 %v1077_v29, %v482_v24  ;;  %v525_v11 = vadd.f32 %v1083_v37, %v506_v48  ;;  %vm354_vm8 = vmor %vm352_vm7, %vm353_vm6 }
 0x1ab   :  { %v529_v15 = vadd.f32 %v1083_v37, %v510_v23 }
 0x1ac   :  { %v395_v5 = vsel %vm394_vm5, %v722_v14, %v391_v55  ;;  %v351_v12 = vmul.f32 %v724_v49, %v350_v35  ;;  %v520_v36 = vadd.f32 %v1083_v37, %v501_v30 }
 0x1ad   :  { %v483_v54 = vmul.f32 %v395_v5, %v1045_v21 }
 0x1ae   :  { %v355_v60 = vsel %vm354_vm8, %v724_v49, %v351_v12  ;;  %679 = vmatmul.msk.f32.gmra.mxu3 %vm130_vm1, %v528_v27  ;;  %671 = vmatmul.msk.f32.gmra.mxu1 %vm130_vm1, %v520_v36 }
 0x1af   :  { %v502_v34 = vmul.f32 %v1077_v29, %v483_v54  ;;  %676 = vmatmul.msk.f32.gmra.mxu2 %vm130_vm1, %v525_v11  ;;  %v479_v13 = vmul.f32 %v355_v60, %v1050_v47 }
 0x1b1   :  { %v498_v8 = vmul.f32 %v1077_v29, %v479_v13  ;;  %v521_v21 = vadd.f32 %v1083_v37, %v502_v34 }
 0x1b3   :  { %v517_v62 = vadd.f32 %v1083_v37, %v498_v8 }
 0x1b5   :  { %668 = vmatmul.msk.f32.gmra.mxu0 %vm130_vm1, %v517_v62 }
 0x1b6   :  { %680 = vmatmul.msk.f32.gmra.mxu3 %vm130_vm1, %v529_v15  ;;  %672 = vmatmul.msk.f32.gmra.mxu1 %vm130_vm1, %v521_v21 }
 0x200   :  { %v597_v33 = vpop.f32.mrf.mxu0 }
 0x201   :  { %645 = vst.msk [vmem:[%s1460_s4] sm:$0xff] %vm113_vm0, %v597_v33 }
 0x205   :  { %v621_v47 = vpop.f32.mrf.mxu2 }
 0x206   :  { %653 = vst.msk [vmem:[%s1460_s4 + $0x40] sm:$0xff] %vm113_vm0, %v621_v47 }
 0x20d   :  { %v633_v29 = vpop.f32.mrf.mxu3 }
 0x20e   :  { %657 = vst.msk [vmem:[%s1460_s4 + $0x60] sm:$0xff] %vm113_vm0, %v633_v29 }
 0x215   :  { %v609_v37 = vpop.f32.mrf.mxu1 }
 0x216   :  { %649 = vst.msk [vmem:[%s1460_s4 + $0x20] sm:$0xff] %vm113_vm0, %v609_v37 }
 0x21b   :  { %v624_v17 = vpop.f32.mrf.mxu2 }
 0x21c   :  { %654 = vst.msk [vmem:[%s1460_s4 + $0x48] sm:$0xff] %vm113_vm0, %v624_v17 }
 0x21d   :  { %v600_v51 = vpop.f32.mrf.mxu0 }
 0x21e   :  { %646 = vst.msk [vmem:[%s1460_s4 + $0x8] sm:$0xff] %vm113_vm0, %v600_v51 }
 0x21f   :  { %v612_v56 = vpop.f32.mrf.mxu1 }
 0x220   :  { %650 = vst.msk [vmem:[%s1460_s4 + $0x28] sm:$0xff] %vm113_vm0, %v612_v56 }
 0x225   :  { %v603_v18 = vpop.f32.mrf.mxu0 }
 0x226   :  { %647 = vst.msk [vmem:[%s1460_s4 + $0x10] sm:$0xff] %vm113_vm0, %v603_v18 }
 0x229   :  { %v636_v28 = vpop.f32.mrf.mxu3 }
 0x22a   :  { %658 = vst.msk [vmem:[%s1460_s4 + $0x68] sm:$0xff] %vm113_vm0, %v636_v28  ;;  %v627_v58 = vpop.f32.mrf.mxu2 }
 0x22b   :  { %655 = vst.msk [vmem:[%s1460_s4 + $0x50] sm:$0xff] %vm113_vm0, %v627_v58  ;;  %v615_v44 = vpop.f32.mrf.mxu1 }
 0x22c   :  { %651 = vst.msk [vmem:[%s1460_s4 + $0x30] sm:$0xff] %vm113_vm0, %v615_v44 }
 0x231   :  { %v639_v40 = vpop.f32.mrf.mxu3 }
 0x232   :  { %659 = vst.msk [vmem:[%s1460_s4 + $0x70] sm:$0xff] %vm113_vm0, %v639_v40  ;;  %v630_v46 = vpop.f32.mrf.mxu2  ;;  %v606_v14 = vpop.f32.mrf.mxu0 }
 0x233   :  { %656 = vst.msk [vmem:[%s1460_s4 + $0x58] sm:$0xff] %vm113_vm0, %v630_v46  ;;  %v618_v2 = vpop.f32.mrf.mxu1 }
 0x234   :  { %648 = vst.msk [vmem:[%s1460_s4 + $0x18] sm:$0xff] %vm113_vm0, %v606_v14 }
 0x235   :  { %652 = vst.msk [vmem:[%s1460_s4 + $0x38] sm:$0xff] %vm113_vm0, %v618_v2 }
 0x239   :  { %v642_v42 = vpop.f32.mrf.mxu3 }
 0x23a   :  { %660 = vst.msk [vmem:[%s1460_s4 + $0x78] sm:$0xff] %vm113_vm0, %v642_v42 }

// kernel: tpu_custom_call.1
= control target key start
LH: loop header
LB: loop body
LE: loop exit
PB: predicated region body
PF: predicated region fallthrough
CT: control target
= control target key end

     0   :  { %s725_s19 = smov 8   ;;  %vm113_vm0 = vcmask 64512   ;;  %vm130_vm1 = vcmask 130048   ;;  %s1456_s0 = inlined_call_operand.vmem [shape: f32[16,2,8,8], index: 0, kind: input, shape index: {}]   ;;  %s1457_s1 = inlined_call_operand.vmem [shape: f32[1,16], index: 1, kind: input, shape index: {}]   ;;  %s1458_s2 = inlined_call_operand.vmem [shape: f32[1,16], index: 2, kind: input, shape index: {}]   ;;  %s1459_s3 = inlined_call_operand.vmem [shape: f32[16,8], index: 3, kind: input, shape index: {}]   ;;  %s1460_s4 = inlined_call_operand.vmem [shape: f32[16,8,8], index: 4, kind: output, shape index: {}]  }
   0x1   :  { %v34_v0 = vld [vmem:[%s1456_s0 + $0x88] sm:$0xff]  ;;  %v36_v2 = vld [vmem:[%s1456_s0 + $0x98] sm:$0xff]  ;;  %v33_v16 = vld [vmem:[%s1456_s0 + $0x80] sm:$0xff] }
   0x2   :  { %v18_v1 = vld [vmem:[%s1456_s0 + $0x8] sm:$0xff]  ;;  %81 = vrot.lane.b32.xlu0 %v34_v0, %s725_s19  ;;  %83 = vrot.lane.b32.xlu2 %v36_v2, %s725_s19  ;;  %v44_v5 = vld [vmem:[%s1456_s0 + $0xd8] sm:$0xff] }
   0x3   :  { %65 = vrot.lane.b32.xlu1 %v18_v1, %s725_s19  ;;  %v42_v3 = vld [vmem:[%s1456_s0 + $0xc8] sm:$0xff]  ;;  %v20_v6 = vld [vmem:[%s1456_s0 + $0x18] sm:$0xff]  ;;  %v17_v17 = vld [vmem:[%s1456_s0] sm:$0xff] }
   0x4   :  { %v26_v4 = vld [vmem:[%s1456_s0 + $0x48] sm:$0xff]  ;;  %v28_v7 = vld [vmem:[%s1456_s0 + $0x58] sm:$0xff]  ;;  %v35_v25 = vld [vmem:[%s1456_s0 + $0x90] sm:$0xff] }
   0x5   :  { %v38_v8 = vld [vmem:[%s1456_s0 + $0xa8] sm:$0xff]  ;;  %v40_v12 = vld [vmem:[%s1456_s0 + $0xb8] sm:$0xff]  ;;  %v41_v27 = vld [vmem:[%s1456_s0 + $0xc0] sm:$0xff] }
   0x6   :  { %v46_v9 = vld [vmem:[%s1456_s0 + $0xe8] sm:$0xff]  ;;  %v48_v13 = vld [vmem:[%s1456_s0 + $0xf8] sm:$0xff]  ;;  %v25_v33 = vld [vmem:[%s1456_s0 + $0x40] sm:$0xff] }
   0x7   :  { %v22_v10 = vld [vmem:[%s1456_s0 + $0x28] sm:$0xff]  ;;  %v24_v14 = vld [vmem:[%s1456_s0 + $0x38] sm:$0xff]  ;;  %v27_v36 = vld [vmem:[%s1456_s0 + $0x50] sm:$0xff] }
   0x8   :  { %v30_v11 = vld [vmem:[%s1456_s0 + $0x68] sm:$0xff]  ;;  %v32_v15 = vld [vmem:[%s1456_s0 + $0x78] sm:$0xff]  ;;  %v19_v37 = vld [vmem:[%s1456_s0 + $0x10] sm:$0xff] }
   0x9   :  { %v43_v45 = vld [vmem:[%s1456_s0 + $0xd0] sm:$0xff]  ;;  %v21_v48 = vld [vmem:[%s1456_s0 + $0x20] sm:$0xff] }
   0xa   :  { %89 = vrot.lane.b32.xlu0 %v42_v3, %s725_s19  ;;  %91 = vrot.lane.b32.xlu2 %v44_v5, %s725_s19  ;;  %v45_v49 = vld [vmem:[%s1456_s0 + $0xe0] sm:$0xff]  ;;  %v47_v59 = vld [vmem:[%s1456_s0 + $0xf0] sm:$0xff] }
   0xb   :  { %73 = vrot.lane.b32.xlu1 %v26_v4, %s725_s19  ;;  %v37_v57 = vld [vmem:[%s1456_s0 + $0xa0] sm:$0xff]  ;;  %v39_v60 = vld [vmem:[%s1456_s0 + $0xb0] sm:$0xff] }
   0xc   :  { %v29_v5 = vld [vmem:[%s1456_s0 + $0x60] sm:$0xff] }
  0x12   :  { %67 = vrot.lane.b32.xlu0 %v20_v6, %s725_s19  ;;  %85 = vrot.lane.b32.xlu2 %v38_v8, %s725_s19 }
  0x13   :  { %75 = vrot.lane.b32.xlu1 %v28_v7, %s725_s19  ;;  %v31_v7 = vld [vmem:[%s1456_s0 + $0x70] sm:$0xff] }
  0x1a   :  { %93 = vrot.lane.b32.xlu0 %v46_v9, %s725_s19  ;;  %77 = vrot.lane.b32.xlu2 %v30_v11, %s725_s19 }
  0x1b   :  { %69 = vrot.lane.b32.xlu1 %v22_v10, %s725_s19 }
  0x22   :  { %87 = vrot.lane.b32.xlu0 %v40_v12, %s725_s19  ;;  %71 = vrot.lane.b32.xlu2 %v24_v14, %s725_s19 }
  0x23   :  { %95 = vrot.lane.b32.xlu1 %v48_v13, %s725_s19  ;;  %v23_v13 = vld [vmem:[%s1456_s0 + $0x30] sm:$0xff] }
  0x2a   :  { %79 = vrot.lane.b32.xlu0 %v32_v15, %s725_s19 }
  0x5c   :  { %v84_v24 = vpop.permute.xlu2 %83 }
  0x5d   :  { %v836_v26 = vsel %vm113_vm0, %v35_v25, %v84_v24 }
  0x5e   :  { %v158_v30 = vsel %vm130_vm1, %v836_v26, 0.0 }
  0x64   :  { %v92_v34 = vpop.permute.xlu2 %91 }
  0x65   :  { %v876_v46 = vsel %vm113_vm0, %v43_v45, %v92_v34 }
  0x66   :  { %v170_v52 = vsel %vm130_vm1, %v876_v46, 0.0 }
  0x6c   :  { %v86_v47 = vpop.permute.xlu2 %85 }
  0x6d   :  { %v900_v58 = vsel %vm113_vm0, %v37_v57, %v86_v47 }
  0x6e   :  { %v161_v0 = vsel %vm130_vm1, %v900_v58, 0.0 }
  0x74   :  { %v82_v18 = vpop.permute.xlu0 %81  ;;  %v78_v61 = vpop.permute.xlu2 %77 }
  0x75   :  { %v66_v19 = vpop.permute.xlu1 %65  ;;  %v823_v20 = vsel %vm113_vm0, %v33_v16, %v82_v18  ;;  %v924_v6 = vsel %vm113_vm0, %v29_v5, %v78_v61  ;;  %v726_v16 = vmov 16.0  }
  0x76   :  { %v826_v21 = vsel %vm113_vm0, %v17_v17, %v66_v19  ;;  %v155_v22 = vsel %vm130_vm1, %v823_v20, 0.0  ;;  %v149_v9 = vsel %vm130_vm1, %v924_v6, 0.0  ;;  %691 = vrcp.f32 %v726_v16 }
  0x77   :  { %v131_v23 = vsel %vm130_vm1, %v826_v21, 0.0  ;;  %156 = vadd.xlane.f32.xlu1 %v155_v22 }
  0x78   :  { %132 = vadd.xlane.f32.xlu0 %v131_v23 }
  0x7c   :  { %v90_v28 = vpop.permute.xlu0 %89  ;;  %v72_v12 = vpop.permute.xlu2 %71 }
  0x7d   :  { %v74_v29 = vpop.permute.xlu1 %73  ;;  %v844_v31 = vsel %vm113_vm0, %v41_v27, %v90_v28  ;;  %v940_v14 = vsel %vm113_vm0, %v23_v13, %v72_v12  ;;  %v692_v17 = vpop.eup %691 }
  0x7e   :  { %v167_v32 = vsel %vm130_vm1, %v844_v31, 0.0  ;;  %v852_v35 = vsel %vm113_vm0, %v25_v33, %v74_v29  ;;  %v140_v15 = vsel %vm130_vm1, %v940_v14, 0.0  ;;  %v180_v18 = vmul.f32 16.0, %v692_v17 }
  0x7f   :  { %168 = vadd.xlane.f32.xlu2 %v167_v32  ;;  %159 = vadd.xlane.f32.xlu1 %v158_v30  ;;  %v143_v40 = vsel %vm130_vm1, %v852_v35, 0.0  ;;  %vm184_vm2 = vweird.f32 %v692_v17 }
  0x80   :  { %v181_v19 = vsub.f32 1.0, %v180_v18 }
  0x82   :  { %v182_v22 = vmul.f32 %v692_v17, %v181_v19 }
  0x84   :  { %v68_v38 = vpop.permute.xlu0 %67  ;;  %v183_v23 = vadd.f32 %v692_v17, %v182_v22 }
  0x85   :  { %v76_v39 = vpop.permute.xlu1 %75  ;;  %v866_v42 = vsel %vm113_vm0, %v19_v37, %v68_v38 }
  0x86   :  { %v863_v41 = vsel %vm113_vm0, %v27_v36, %v76_v39  ;;  %v134_v44 = vsel %vm130_vm1, %v866_v42, 0.0  ;;  %v944_v24 = vsel %vm184_vm2, %v692_v17, %v183_v23 }
  0x87   :  { %v146_v43 = vsel %vm130_vm1, %v863_v41, 0.0  ;;  %144 = vadd.xlane.f32.xlu2 %v143_v40  ;;  %135 = vadd.xlane.f32.xlu0 %v134_v44 }
  0x88   :  { %147 = vadd.xlane.f32.xlu1 %v146_v43 }
  0x8c   :  { %v94_v50 = vpop.permute.xlu0 %93 }
  0x8d   :  { %v70_v51 = vpop.permute.xlu1 %69  ;;  %v890_v54 = vsel %vm113_vm0, %v45_v49, %v94_v50 }
  0x8e   :  { %v887_v53 = vsel %vm113_vm0, %v21_v48, %v70_v51  ;;  %v173_v56 = vsel %vm130_vm1, %v890_v54, 0.0 }
  0x8f   :  { %v137_v55 = vsel %vm130_vm1, %v887_v53, 0.0  ;;  %171 = vadd.xlane.f32.xlu2 %v170_v52  ;;  %174 = vadd.xlane.f32.xlu0 %v173_v56 }
  0x90   :  { %138 = vadd.xlane.f32.xlu1 %v137_v55 }
  0x94   :  { %v88_v62 = vpop.permute.xlu0 %87 }
  0x95   :  { %v96_v63 = vpop.permute.xlu1 %95  ;;  %v914_v2 = vsel %vm113_vm0, %v39_v60, %v88_v62 }
  0x96   :  { %v911_v1 = vsel %vm113_vm0, %v47_v59, %v96_v63  ;;  %v164_v4 = vsel %vm130_vm1, %v914_v2, 0.0 }
  0x97   :  { %v176_v3 = vsel %vm130_vm1, %v911_v1, 0.0  ;;  %162 = vadd.xlane.f32.xlu2 %v161_v0  ;;  %165 = vadd.xlane.f32.xlu0 %v164_v4 }
  0x98   :  { %177 = vadd.xlane.f32.xlu1 %v176_v3 }
  0x9c   :  { %v80_v8 = vpop.permute.xlu0 %79 }
  0x9d   :  { %v932_v10 = vsel %vm113_vm0, %v31_v7, %v80_v8 }
  0x9e   :  { %v152_v11 = vsel %vm130_vm1, %v932_v10, 0.0 }
  0x9f   :  { %150 = vadd.xlane.f32.xlu2 %v149_v9  ;;  %153 = vadd.xlane.f32.xlu0 %v152_v11 }
  0xa7   :  { %141 = vadd.xlane.f32.xlu2 %v140_v15 }
  0xea   :  { %v157_v25 = vpop.xlane.xlu1 %156 }
  0xeb   :  { %v133_v27 = vpop.xlane.xlu0 %132  ;;  %v194_v28 = vmul.f32 %v944_v24, %v157_v25 }
  0xec   :  { %v186_v29 = vmul.f32 %v944_v24, %v133_v27 }
  0xed   :  { %v949_v30 = vsub.f32 %v823_v20, %v194_v28 }
  0xee   :  { %v952_v32 = vsub.f32 %v826_v21, %v186_v29 }
  0xef   :  { %v226_v33 = vmul.f32 %v949_v30, %v949_v30 }
  0xf0   :  { %v218_v34 = vmul.f32 %v952_v32, %v952_v32 }
  0xf1   :  { %v258_v36 = vsel %vm130_vm1, %v226_v33, 0.0 }
  0xf2   :  { %v234_v37 = vsel %vm130_vm1, %v218_v34, 0.0  ;;  %v169_v38 = vpop.xlane.xlu2 %168  ;;  %259 = vadd.xlane.f32.xlu1 %v258_v36  ;;  %v160_v39 = vpop.xlane.xlu1 %159 }
  0xf3   :  { %235 = vadd.xlane.f32.xlu0 %v234_v37  ;;  %v198_v20 = vmul.f32 %v944_v24, %v169_v38  ;;  %v195_v21 = vmul.f32 %v944_v24, %v160_v39 }
  0xf5   :  { %v962_v40 = vsub.f32 %v844_v31, %v198_v20  ;;  %v968_v44 = vsub.f32 %v836_v26, %v195_v21 }
  0xf7   :  { %v230_v43 = vmul.f32 %v962_v40, %v962_v40  ;;  %v227_v52 = vmul.f32 %v968_v44, %v968_v44 }
  0xf9   :  { %v270_v45 = vsel %vm130_vm1, %v230_v43, 0.0  ;;  %v261_v59 = vsel %vm130_vm1, %v227_v52, 0.0 }
  0xfa   :  { %271 = vadd.xlane.f32.xlu2 %v270_v45  ;;  %v145_v47 = vpop.xlane.xlu2 %144  ;;  %v136_v50 = vpop.xlane.xlu0 %135 }
  0xfb   :  { %v148_v48 = vpop.xlane.xlu1 %147  ;;  %v190_v49 = vmul.f32 %v944_v24, %v145_v47  ;;  %v187_v55 = vmul.f32 %v944_v24, %v136_v50 }
  0xfc   :  { %v191_v31 = vmul.f32 %v944_v24, %v148_v48 }
  0xfd   :  { %v973_v51 = vsub.f32 %v852_v35, %v190_v49  ;;  %v987_v35 = vsub.f32 %v866_v42, %v187_v55 }
  0xfe   :  { %v982_v56 = vsub.f32 %v863_v41, %v191_v31  ;;  %v531_v31 = vld [vmem:[%s1459_s3 + $0x8] sm:$0xff] }
  0xff   :  { %v222_v26 = vmul.f32 %v973_v51, %v973_v51  ;;  %v219_v42 = vmul.f32 %v987_v35, %v987_v35  ;;  %594 = vmatpush.msra.mxu0 %v531_v31  ;;  %682 = vmatpush.msra.mxu2 %v531_v31 }
 0x100   :  { %v223_v3 = vmul.f32 %v982_v56, %v982_v56  ;;  %683 = vmatpush.msra.mxu3 %v531_v31  ;;  %681 = vmatpush.msra.mxu1 %v531_v31 }
 0x101   :  { %v246_v57 = vsel %vm130_vm1, %v222_v26, 0.0  ;;  %v237_v13 = vsel %vm130_vm1, %v219_v42, 0.0 }
 0x102   :  { %v172_v60 = vpop.xlane.xlu2 %171  ;;  %247 = vadd.xlane.f32.xlu1 %v246_v57  ;;  %262 = vadd.xlane.f32.xlu2 %v261_v59  ;;  %v175_v63 = vpop.xlane.xlu0 %174  ;;  %v249_v8 = vsel %vm130_vm1, %v223_v3, 0.0 }
 0x103   :  { %v139_v61 = vpop.xlane.xlu1 %138  ;;  %v199_v62 = vmul.f32 %v944_v24, %v172_v60  ;;  %v200_v4 = vmul.f32 %v944_v24, %v175_v63 }
 0x104   :  { %v188_v41 = vmul.f32 %v944_v24, %v139_v61 }
 0x105   :  { %v991_v0 = vsub.f32 %v876_v46, %v199_v62  ;;  %v1007_v9 = vsub.f32 %v890_v54, %v200_v4 }
 0x106   :  { %v1002_v7 = vsub.f32 %v887_v53, %v188_v41 }
 0x107   :  { %v231_v5 = vmul.f32 %v991_v0, %v991_v0  ;;  %v232_v19 = vmul.f32 %v1007_v9, %v1007_v9 }
 0x108   :  { %v220_v18 = vmul.f32 %v1002_v7, %v1002_v7 }
 0x109   :  { %v273_v46 = vsel %vm130_vm1, %v231_v5, 0.0  ;;  %v276_v29 = vsel %vm130_vm1, %v232_v19, 0.0 }
 0x10a   :  { %v163_v11 = vpop.xlane.xlu2 %162  ;;  %250 = vadd.xlane.f32.xlu2 %v249_v8  ;;  %274 = vadd.xlane.f32.xlu0 %v273_v46  ;;  %v166_v16 = vpop.xlane.xlu0 %165  ;;  %v240_v25 = vsel %vm130_vm1, %v220_v18, 0.0 }
 0x10b   :  { %v178_v12 = vpop.xlane.xlu1 %177  ;;  %v196_v15 = vmul.f32 %v944_v24, %v163_v11  ;;  %238 = vadd.xlane.f32.xlu1 %v237_v13  ;;  %v197_v54 = vmul.f32 %v944_v24, %v166_v16 }
 0x10c   :  { %v201_v17 = vmul.f32 %v944_v24, %v178_v12 }
 0x10d   :  { %v1012_v53 = vsub.f32 %v900_v58, %v196_v15  ;;  %v1028_v27 = vsub.f32 %v914_v2, %v197_v54 }
 0x10e   :  { %v1023_v23 = vsub.f32 %v911_v1, %v201_v17 }
 0x10f   :  { %v228_v22 = vmul.f32 %v1012_v53, %v1012_v53  ;;  %v229_v2 = vmul.f32 %v1028_v27, %v1028_v27 }
 0x110   :  { %v233_v1 = vmul.f32 %v1023_v23, %v1023_v23 }
 0x111   :  { %v264_v58 = vsel %vm130_vm1, %v228_v22, 0.0  ;;  %v267_v43 = vsel %vm130_vm1, %v229_v2, 0.0 }
 0x112   :  { %v151_v28 = vpop.xlane.xlu2 %150  ;;  %241 = vadd.xlane.f32.xlu2 %v240_v25  ;;  %265 = vadd.xlane.f32.xlu0 %v264_v58  ;;  %v154_v34 = vpop.xlane.xlu0 %153  ;;  %v279_v39 = vsel %vm130_vm1, %v233_v1, 0.0 }
 0x113   :  { %v192_v33 = vmul.f32 %v944_v24, %v151_v28  ;;  %277 = vadd.xlane.f32.xlu1 %v276_v29  ;;  %v193_v37 = vmul.f32 %v944_v24, %v154_v34  ;;  %v1077_v29 = vld [vmem:[%s1457_s1] ss:$0 sm:$0xff] }
 0x115   :  { %v1033_v36 = vsub.f32 %v924_v6, %v192_v33  ;;  %v1045_v21 = vsub.f32 %v932_v10, %v193_v37  ;;  %v1083_v37 = vld [vmem:[%s1458_s2] ss:$0 sm:$0xff] }
 0x117   :  { %v224_v38 = vmul.f32 %v1033_v36, %v1033_v36  ;;  %v225_v48 = vmul.f32 %v1045_v21, %v1045_v21 }
 0x119   :  { %v252_v20 = vsel %vm130_vm1, %v224_v38, 0.0  ;;  %v255_v50 = vsel %vm130_vm1, %v225_v48, 0.0 }
 0x11a   :  { %v142_v6 = vpop.xlane.xlu2 %141  ;;  %280 = vadd.xlane.f32.xlu2 %v279_v39  ;;  %253 = vadd.xlane.f32.xlu0 %v252_v20 }
 0x11b   :  { %v189_v45 = vmul.f32 %v944_v24, %v142_v6  ;;  %268 = vadd.xlane.f32.xlu1 %v267_v43 }
 0x11d   :  { %v1050_v47 = vsub.f32 %v940_v14, %v189_v45  ;;  %v530_v14 = vld [vmem:[%s1459_s3] sm:$0xff] }
 0x11e   :  { %595 = vmatpush.msra.mxu0 %v530_v14  ;;  %685 = vmatpush.msra.mxu2 %v530_v14 }
 0x11f   :  { %v221_v49 = vmul.f32 %v1050_v47, %v1050_v47  ;;  %686 = vmatpush.msra.mxu3 %v530_v14  ;;  %684 = vmatpush.msra.mxu1 %v530_v14 }
 0x121   :  { %v243_v10 = vsel %vm130_vm1, %v221_v49, 0.0 }
 0x122   :  { %244 = vadd.xlane.f32.xlu0 %v243_v10 }
 0x123   :  { %256 = vadd.xlane.f32.xlu1 %v255_v50 }
 0x165   :  { %v260_v52 = vpop.xlane.xlu1 %259 }
 0x166   :  { %v236_v55 = vpop.xlane.xlu0 %235  ;;  %v290_v26 = vmul.f32 %v260_v52, %v944_v24 }
 0x167   :  { %v282_v57 = vmul.f32 %v236_v55, %v944_v24 }
 0x168   :  { %v308_v59 = vadd.f32 1e-05, %v290_v26 }
 0x169   :  { %v300_v60 = vadd.f32 1e-05, %v282_v57 }
 0x16a   :  { %693 = vrsqrt.f32 %v308_v59  ;;  %vm402_vm5 = vweird.f32 %v308_v59 }
 0x16b   :  { %695 = vrsqrt.f32 %v300_v60  ;;  %vm322_vm7 = vweird.f32 %v300_v60 }
 0x16d   :  { %v272_v61 = vpop.xlane.xlu2 %271 }
 0x16e   :  { %v294_v62 = vmul.f32 %v272_v61, %v944_v24 }
 0x170   :  { %v694_v63 = vpop.eup %693  ;;  %v312_v41 = vadd.f32 1e-05, %v294_v62 }
 0x171   :  { %v696_v3 = vpop.eup %695  ;;  %v397_v4 = vmul.f32 %v694_v63, %v308_v59  ;;  %vm403_vm3 = vweird.f32 %v694_v63 }
 0x172   :  { %v317_v42 = vmul.f32 %v696_v3, %v300_v60  ;;  %697 = vrsqrt.f32 %v312_v41  ;;  %vm323_vm4 = vweird.f32 %v696_v3  ;;  %vm404_vm6 = vmor %vm402_vm5, %vm403_vm3  ;;  %vm442_vm10 = vweird.f32 %v312_v41 }
 0x173   :  { %v398_v5 = vmul.f32 %v694_v63, %v397_v4  ;;  %vm324_vm8 = vmor %vm322_vm7, %vm323_vm4 }
 0x174   :  { %v318_v8 = vmul.f32 %v696_v3, %v317_v42 }
 0x175   :  { %v399_v46 = vmul.f32 0.5, %v398_v5  ;;  %v263_v11 = vpop.xlane.xlu2 %262  ;;  %v248_v12 = vpop.xlane.xlu1 %247 }
 0x176   :  { %v319_v13 = vmul.f32 0.5, %v318_v8  ;;  %v291_v15 = vmul.f32 %v263_v11, %v944_v24  ;;  %v286_v16 = vmul.f32 %v248_v12, %v944_v24 }
 0x177   :  { %v400_v17 = vsub.f32 1.5, %v399_v46 }
 0x178   :  { %v698_v18 = vpop.eup %697  ;;  %v320_v54 = vsub.f32 1.5, %v319_v13  ;;  %v1069_v19 = vadd.f32 1e-05, %v291_v15  ;;  %v1071_v22 = vadd.f32 1e-05, %v286_v16 }
 0x179   :  { %v401_v25 = vmul.f32 %v694_v63, %v400_v17  ;;  %v437_v58 = vmul.f32 %v698_v18, %v312_v41  ;;  %vm443_vm9 = vweird.f32 %v698_v18 }
 0x17a   :  { %v321_v28 = vmul.f32 %v696_v3, %v320_v54  ;;  %699 = vrsqrt.f32 %v1069_v19  ;;  %vm1105_vm11 = vmor %vm442_vm10, %vm443_vm9  ;;  %vm412_vm12 = vweird.f32 %v1069_v19  ;;  %vm362_vm15 = vweird.f32 %v1071_v22 }
 0x17b   :  { %v405_v33 = vsel %vm404_vm6, %v694_v63, %v401_v25  ;;  %v438_v34 = vmul.f32 %v698_v18, %v437_v58  ;;  %701 = vrsqrt.f32 %v1071_v22 }
 0x17c   :  { %v325_v1 = vsel %vm324_vm8, %v696_v3, %v321_v28  ;;  %v484_v2 = vmul.f32 %v405_v33, %v949_v30 }
 0x17d   :  { %v439_v38 = vmul.f32 0.5, %v438_v34  ;;  %v251_v39 = vpop.xlane.xlu2 %250  ;;  %v275_v20 = vpop.xlane.xlu0 %274  ;;  %v476_v6 = vmul.f32 %v325_v1, %v952_v32 }
 0x17e   :  { %v287_v43 = vmul.f32 %v251_v39, %v944_v24  ;;  %v239_v45 = vpop.xlane.xlu1 %238  ;;  %v295_v48 = vmul.f32 %v275_v20, %v944_v24  ;;  %v503_v49 = vmul.f32 %v1077_v29, %v484_v2 }
 0x17f   :  { %v440_v10 = vsub.f32 1.5, %v439_v38  ;;  %v283_v50 = vmul.f32 %v239_v45, %v944_v24  ;;  %v495_v52 = vmul.f32 %v1077_v29, %v476_v6 }
 0x180   :  { %v1091_v31 = vpop.eup %699  ;;  %v1093_v14 = vadd.f32 1e-05, %v287_v43  ;;  %v1095_v30 = vadd.f32 1e-05, %v295_v48  ;;  %v522_v32 = vadd.f32 %v1083_v37, %v503_v49 }
 0x181   :  { %v1099_v55 = vpop.eup %701  ;;  %v441_v26 = vmul.f32 %v698_v18, %v440_v10  ;;  %v407_v57 = vmul.f32 %v1091_v31, %v1069_v19  ;;  %v1103_v59 = vadd.f32 1e-05, %v283_v50  ;;  %v514_v3 = vadd.f32 %v1083_v37, %v495_v52 }
 0x182   :  { %v357_v61 = vmul.f32 %v1099_v55, %v1071_v22  ;;  %703 = vrsqrt.f32 %v1093_v14  ;;  %673 = vmatmul.msk.f32.vlgmr.msra.gmra.mxu2 %vm130_vm1, %v522_v32  ;;  %vm363_vm13 = vweird.f32 %v1099_v55  ;;  %vm413_vm14 = vweird.f32 %v1091_v31 }
 0x183   :  { %v445_v62 = vsel %vm1105_vm11, %v698_v18, %v441_v26  ;;  %v408_v63 = vmul.f32 %v1091_v31, %v407_v57  ;;  %705 = vrsqrt.f32 %v1103_v59  ;;  %665 = vmatmul.msk.f32.vlgmr.msra.gmra.mxu0 %vm130_vm1, %v514_v3  ;;  %vm1156_vm2 = vmor %vm362_vm15, %vm363_vm13  ;;  %vm372_vm3 = vweird.f32 %v1093_v14 }
 0x184   :  { %v358_v41 = vmul.f32 %v1099_v55, %v357_v61  ;;  %707 = vrsqrt.f32 %v1095_v30  ;;  %v488_v13 = vmul.f32 %v445_v62, %v962_v40  ;;  %vm1167_vm4 = vmor %vm412_vm12, %vm413_vm14  ;;  %vm332_vm5 = vweird.f32 %v1103_v59 }
 0x185   :  { %v409_v4 = vmul.f32 0.5, %v408_v63  ;;  %v242_v42 = vpop.xlane.xlu2 %241  ;;  %v266_v5 = vpop.xlane.xlu0 %265  ;;  %vm452_vm8 = vweird.f32 %v1095_v30 }
 0x186   :  { %v359_v8 = vmul.f32 0.5, %v358_v41  ;;  %v284_v46 = vmul.f32 %v242_v42, %v944_v24  ;;  %v278_v11 = vpop.xlane.xlu1 %277  ;;  %v292_v12 = vmul.f32 %v266_v5, %v944_v24  ;;  %v507_v1 = vmul.f32 %v1077_v29, %v488_v13 }
 0x187   :  { %v296_v15 = vmul.f32 %v278_v11, %v944_v24  ;;  %v410_v17 = vsub.f32 1.5, %v409_v4 }
 0x188   :  { %v1125_v16 = vpop.eup %703  ;;  %v360_v18 = vsub.f32 1.5, %v359_v8  ;;  %v1127_v54 = vadd.f32 1e-05, %v284_v46  ;;  %v1135_v33 = vadd.f32 1e-05, %v292_v12  ;;  %v526_v52 = vadd.f32 %v1083_v37, %v507_v1 }
 0x189   :  { %v1129_v25 = vpop.eup %705  ;;  %v367_v58 = vmul.f32 %v1125_v16, %v1093_v14  ;;  %v1133_v28 = vadd.f32 1e-05, %v296_v15  ;;  %v411_v20 = vmul.f32 %v1091_v31, %v410_v17  ;;  %vm373_vm6 = vweird.f32 %v1125_v16 }
 0x18a   :  { %v1137_v34 = vpop.eup %707  ;;  %v327_v40 = vmul.f32 %v1129_v25, %v1103_v59  ;;  %709 = vrsqrt.f32 %v1127_v54  ;;  %v361_v2 = vmul.f32 %v1099_v55, %v360_v18  ;;  %677 = vmatmul.msk.f32.vlgmr.msra.gmra.mxu3 %vm130_vm1, %v526_v52  ;;  %vm333_vm7 = vweird.f32 %v1129_v25  ;;  %vm1214_vm11 = vmor %vm372_vm3, %vm373_vm6 }
 0x18b   :  { %v368_v38 = vmul.f32 %v1125_v16, %v367_v58  ;;  %v447_v39 = vmul.f32 %v1137_v34, %v1095_v30  ;;  %711 = vrsqrt.f32 %v1133_v28  ;;  %v415_v63 = vsel %vm1167_vm4, %v1091_v31, %v411_v20  ;;  %vm1235_vm15 = vmor %vm332_vm5, %vm333_vm7 }
 0x18c   :  { %v328_v6 = vmul.f32 %v1129_v25, %v327_v40  ;;  %713 = vrsqrt.f32 %v1135_v33  ;;  %v365_v57 = vsel %vm1156_vm2, %v1099_v55, %v361_v2  ;;  %vm453_vm9 = vweird.f32 %v1137_v34 }
 0x18d   :  { %v369_v43 = vmul.f32 0.5, %v368_v38  ;;  %v448_v45 = vmul.f32 %v1137_v34, %v447_v39  ;;  %v281_v48 = vpop.xlane.xlu2 %280  ;;  %v254_v49 = vpop.xlane.xlu0 %253  ;;  %v480_v8 = vmul.f32 %v365_v57, %v973_v51  ;;  %v485_v13 = vmul.f32 %v415_v63, %v968_v44  ;;  %vm1267_vm4 = vmor %vm452_vm8, %vm453_vm9 }
 0x18e   :  { %v329_v50 = vmul.f32 0.5, %v328_v6  ;;  %v297_v32 = vmul.f32 %v281_v48, %v944_v24  ;;  %v269_v26 = vpop.xlane.xlu1 %268  ;;  %v288_v4 = vmul.f32 %v254_v49, %v944_v24  ;;  %vm342_vm10 = vweird.f32 %v1127_v54 }
 0x18f   :  { %v370_v60 = vsub.f32 1.5, %v369_v43  ;;  %v293_v61 = vmul.f32 %v269_v26, %v944_v24  ;;  %v449_v41 = vmul.f32 0.5, %v448_v45  ;;  %vm422_vm13 = vweird.f32 %v1135_v33 }
 0x190   :  { %v1176_v62 = vpop.eup %709  ;;  %v330_v19 = vsub.f32 1.5, %v329_v50  ;;  %v1182_v3 = vadd.f32 1e-05, %v297_v32  ;;  %vm462_vm14 = vweird.f32 %v1133_v28  ;;  %v1228_v1 = vadd.f32 1e-05, %v288_v4 }
 0x191   :  { %v337_v55 = vmul.f32 %v1176_v62, %v1127_v54  ;;  %v1189_v42 = vpop.eup %711  ;;  %v1192_v5 = vmul.f32 %v1125_v16, %v370_v60  ;;  %v1195_v31 = vadd.f32 1e-05, %v293_v61  ;;  %v450_v17 = vsub.f32 1.5, %v449_v41 }
 0x192   :  { %715 = vrsqrt.f32 %v1182_v3  ;;  %v1198_v46 = vpop.eup %713  ;;  %v457_v12 = vmul.f32 %v1189_v42, %v1133_v28  ;;  %v331_v15 = vmul.f32 %v1129_v25, %v330_v19  ;;  %vm343_vm12 = vweird.f32 %v1176_v62 }
 0x193   :  { %v338_v11 = vmul.f32 %v1176_v62, %v337_v55  ;;  %v417_v51 = vmul.f32 %v1198_v46, %v1135_v33  ;;  %717 = vrsqrt.f32 %v1195_v31  ;;  %v375_v40 = vsel %vm1214_vm11, %v1125_v16, %v1192_v5  ;;  %vm1284_vm5 = vmor %vm342_vm10, %vm343_vm12 }
 0x194   :  { %v458_v44 = vmul.f32 %v1189_v42, %v457_v12  ;;  %v499_v2 = vmul.f32 %v1077_v29, %v480_v8  ;;  %v504_v16 = vmul.f32 %v1077_v29, %v485_v13  ;;  %v335_v49 = vsel %vm1235_vm15, %v1129_v25, %v331_v15 }
 0x195   :  { %v339_v58 = vmul.f32 0.5, %v338_v11  ;;  %v418_v14 = vmul.f32 %v1198_v46, %v417_v51  ;;  %v245_v45 = vpop.xlane.xlu0 %244  ;;  %719 = vrsqrt.f32 %v1228_v1  ;;  %v451_v50 = vmul.f32 %v1137_v34, %v450_v17 }
 0x196   :  { %v257_v38 = vpop.xlane.xlu1 %256  ;;  %v459_v6 = vmul.f32 0.5, %v458_v44  ;;  %v518_v59 = vadd.f32 %v1083_v37, %v499_v2  ;;  %v523_v57 = vadd.f32 %v1083_v37, %v504_v16  ;;  %v285_v25 = vmul.f32 %v245_v45, %v944_v24 }
 0x197   :  { %v340_v20 = vsub.f32 1.5, %v339_v58  ;;  %v289_v43 = vmul.f32 %v257_v38, %v944_v24  ;;  %v419_v10 = vmul.f32 0.5, %v418_v14  ;;  %vm463_vm2 = vweird.f32 %v1189_v42 }
 0x198   :  { %v1241_v48 = vpop.eup %715  ;;  %v460_v32 = vsub.f32 1.5, %v459_v6  ;;  %669 = vmatmul.msk.f32.vlgmr.msra.gmra.mxu1 %vm130_vm1, %v518_v59  ;;  %vm423_vm3 = vweird.f32 %v1198_v46  ;;  %v477_v19 = vmul.f32 %v335_v49, %v987_v35  ;;  %674 = vmatmul.msk.f32.gmra.mxu2 %vm130_vm1, %v523_v57  ;;  %v455_v35 = vsel %vm1267_vm4, %v1137_v34, %v451_v50  ;;  %vm1309_vm8 = vmor %vm462_vm14, %vm463_vm2 }
 0x199   :  { %v341_v52 = vmul.f32 %v1176_v62, %v340_v20  ;;  %v467_v26 = vmul.f32 %v1241_v48, %v1182_v3  ;;  %v420_v22 = vsub.f32 1.5, %v419_v10  ;;  %v1254_v60 = vadd.f32 1e-05, %v289_v43  ;;  %v1257_v61 = vpop.eup %717  ;;  %vm1298_vm7 = vmor %vm422_vm13, %vm423_vm3 }
 0x19a   :  { %v461_v24 = vmul.f32 %v1189_v42, %v460_v32  ;;  %v427_v4 = vmul.f32 %v1257_v61, %v1195_v31  ;;  %vm432_vm6 = vweird.f32 %v1195_v31  ;;  %v1289_v8 = vadd.f32 1e-05, %v285_v25 }
 0x19b   :  { %v468_v63 = vmul.f32 %v1241_v48, %v467_v26  ;;  %v421_v55 = vmul.f32 %v1198_v46, %v420_v22  ;;  %721 = vrsqrt.f32 %v1254_v60  ;;  %v720_v11 = vpop.eup %719  ;;  %v345_v12 = vsel %vm1284_vm5, %v1176_v62, %v341_v52 }
 0x19c   :  { %v428_v34 = vmul.f32 %v1257_v61, %v427_v4  ;;  %v496_v13 = vmul.f32 %v1077_v29, %v477_v19  ;;  %v481_v15 = vmul.f32 %v375_v40, %v982_v56  ;;  %v377_v51 = vmul.f32 %v720_v11, %v1228_v1 }
 0x19d   :  { %v469_v5 = vmul.f32 0.5, %v468_v63  ;;  %v425_v33 = vsel %vm1298_vm7, %v1198_v46, %v421_v55  ;;  %723 = vrsqrt.f32 %v1289_v8  ;;  %v465_v56 = vsel %vm1309_vm8, %v1189_v42, %v461_v24 }
 0x19e   :  { %v429_v18 = vmul.f32 0.5, %v428_v34  ;;  %v515_v28 = vadd.f32 %v1083_v37, %v496_v13  ;;  %v500_v58 = vmul.f32 %v1077_v29, %v481_v15  ;;  %vm473_vm9 = vweird.f32 %v1241_v48 }
 0x19f   :  { %v470_v17 = vsub.f32 1.5, %v469_v5  ;;  %v378_v44 = vmul.f32 %v720_v11, %v377_v51  ;;  %v489_v40 = vmul.f32 %v455_v35, %v991_v0  ;;  %v478_v46 = vmul.f32 %v345_v12, %v1002_v7 }
 0x1a0   :  { %v430_v2 = vsub.f32 1.5, %v429_v18  ;;  %vm433_vm10 = vweird.f32 %v1257_v61  ;;  %666 = vmatmul.msk.f32.gmra.mxu0 %vm130_vm1, %v515_v28  ;;  %v519_v42 = vadd.f32 %v1083_v37, %v500_v58  ;;  %v486_v38 = vmul.f32 %v425_v33, %v1012_v53 }
 0x1a1   :  { %v722_v14 = vpop.eup %721  ;;  %v471_v39 = vmul.f32 %v1241_v48, %v470_v17  ;;  %v379_v20 = vmul.f32 0.5, %v378_v44  ;;  %v490_v16 = vmul.f32 %v465_v56, %v1007_v9  ;;  %v508_v7 = vmul.f32 %v1077_v29, %v489_v40  ;;  %vm1343_vm12 = vmor %vm432_vm6, %vm433_vm10 }
 0x1a2   :  { %v387_v6 = vmul.f32 %v722_v14, %v1254_v60  ;;  %v431_v0 = vmul.f32 %v1257_v61, %v430_v2  ;;  %670 = vmatmul.msk.f32.gmra.mxu1 %vm130_vm1, %v519_v42  ;;  %v497_v43 = vmul.f32 %v1077_v29, %v478_v46  ;;  %v505_v45 = vmul.f32 %v1077_v29, %v486_v38 }
 0x1a3   :  { %v724_v49 = vpop.eup %723  ;;  %vm472_vm11 = vweird.f32 %v1182_v3  ;;  %v380_v9 = vsub.f32 1.5, %v379_v20  ;;  %vm383_vm13 = vweird.f32 %v720_v11  ;;  %vm382_vm14 = vweird.f32 %v1228_v1 }
 0x1a4   :  { %v388_v10 = vmul.f32 %v722_v14, %v387_v6  ;;  %v435_v59 = vsel %vm1343_vm12, %v1257_v61, %v431_v0  ;;  %v347_v50 = vmul.f32 %v724_v49, %v1289_v8  ;;  %v527_v3 = vadd.f32 %v1083_v37, %v508_v7  ;;  %vm1355_vm15 = vmor %vm472_vm11, %vm473_vm9 }
 0x1a5   :  { %v381_v52 = vmul.f32 %v720_v11, %v380_v9  ;;  %v516_v26 = vadd.f32 %v1083_v37, %v497_v43  ;;  %v524_v22 = vadd.f32 %v1083_v37, %v505_v45  ;;  %v475_v1 = vsel %vm1355_vm15, %v1241_v48, %v471_v39  ;;  %vm384_vm2 = vmor %vm382_vm14, %vm383_vm13 }
 0x1a6   :  { %v389_v32 = vmul.f32 0.5, %v388_v10  ;;  %v348_v57 = vmul.f32 %v724_v49, %v347_v50  ;;  %678 = vmatmul.msk.f32.gmra.mxu3 %vm130_vm1, %v527_v3  ;;  %v509_v25 = vmul.f32 %v1077_v29, %v490_v16  ;;  %v487_v61 = vmul.f32 %v435_v59, %v1028_v27 }
 0x1a7   :  { %v385_v63 = vsel %vm384_vm2, %v720_v11, %v381_v52  ;;  %vm393_vm3 = vweird.f32 %v722_v14  ;;  %675 = vmatmul.msk.f32.gmra.mxu2 %vm130_vm1, %v524_v22  ;;  %vm392_vm4 = vweird.f32 %v1254_v60  ;;  %v491_v4 = vmul.f32 %v475_v1, %v1023_v23 }
 0x1a8   :  { %v390_v19 = vsub.f32 1.5, %v389_v32  ;;  %v349_v41 = vmul.f32 0.5, %v348_v57  ;;  %667 = vmatmul.msk.f32.gmra.mxu0 %vm130_vm1, %v516_v26  ;;  %v482_v24 = vmul.f32 %v385_v63, %v1033_v36  ;;  %v506_v48 = vmul.f32 %v1077_v29, %v487_v61  ;;  %vm394_vm5 = vmor %vm392_vm4, %vm393_vm3 }
 0x1a9   :  { %vm353_vm6 = vweird.f32 %v724_v49  ;;  %v528_v27 = vadd.f32 %v1083_v37, %v509_v25  ;;  %vm352_vm7 = vweird.f32 %v1289_v8  ;;  %v510_v23 = vmul.f32 %v1077_v29, %v491_v4 }
 0x1aa   :  { %v391_v55 = vmul.f32 %v722_v14, %v390_v19  ;;  %v350_v35 = vsub.f32 1.5, %v349_v41  ;;  %v501_v30 = vmul.f32 %v1077_v29, %v482_v24  ;;  %v525_v11 = vadd.f32 %v1083_v37, %v506_v48  ;;  %vm354_vm8 = vmor %vm352_vm7, %vm353_vm6 }
 0x1ab   :  { %v529_v15 = vadd.f32 %v1083_v37, %v510_v23 }
 0x1ac   :  { %v395_v5 = vsel %vm394_vm5, %v722_v14, %v391_v55  ;;  %v351_v12 = vmul.f32 %v724_v49, %v350_v35  ;;  %v520_v36 = vadd.f32 %v1083_v37, %v501_v30 }
 0x1ad   :  { %v483_v54 = vmul.f32 %v395_v5, %v1045_v21 }
 0x1ae   :  { %v355_v60 = vsel %vm354_vm8, %v724_v49, %v351_v12  ;;  %679 = vmatmul.msk.f32.gmra.mxu3 %vm130_vm1, %v528_v27  ;;  %671 = vmatmul.msk.f32.gmra.mxu1 %vm130_vm1, %v520_v36 }
 0x1af   :  { %v502_v34 = vmul.f32 %v1077_v29, %v483_v54  ;;  %676 = vmatmul.msk.f32.gmra.mxu2 %vm130_vm1, %v525_v11  ;;  %v479_v13 = vmul.f32 %v355_v60, %v1050_v47 }
 0x1b1   :  { %v498_v8 = vmul.f32 %v1077_v29, %v479_v13  ;;  %v521_v21 = vadd.f32 %v1083_v37, %v502_v34 }
 0x1b3   :  { %v517_v62 = vadd.f32 %v1083_v37, %v498_v8 }
 0x1b5   :  { %668 = vmatmul.msk.f32.gmra.mxu0 %vm130_vm1, %v517_v62 }
 0x1b6   :  { %680 = vmatmul.msk.f32.gmra.mxu3 %vm130_vm1, %v529_v15  ;;  %672 = vmatmul.msk.f32.gmra.mxu1 %vm130_vm1, %v521_v21 }
 0x200   :  { %v597_v33 = vpop.f32.mrf.mxu0 }
 0x201   :  { %645 = vst.msk [vmem:[%s1460_s4] sm:$0xff] %vm113_vm0, %v597_v33 }
 0x205   :  { %v621_v47 = vpop.f32.mrf.mxu2 }
 0x206   :  { %653 = vst.msk [vmem:[%s1460_s4 + $0x40] sm:$0xff] %vm113_vm0, %v621_v47 }
 0x20d   :  { %v633_v29 = vpop.f32.mrf.mxu3 }
 0x20e   :  { %657 = vst.msk [vmem:[%s1460_s4 + $0x60] sm:$0xff] %vm113_vm0, %v633_v29 }
 0x215   :  { %v609_v37 = vpop.f32.mrf.mxu1 }
 0x216   :  { %649 = vst.msk [vmem:[%s1460_s4 + $0x20] sm:$0xff] %vm113_vm0, %v609_v37 }
 0x21b   :  { %v624_v17 = vpop.f32.mrf.mxu2 }
 0x21c   :  { %654 = vst.msk [vmem:[%s1460_s4 + $0x48] sm:$0xff] %vm113_vm0, %v624_v17 }
 0x21d   :  { %v600_v51 = vpop.f32.mrf.mxu0 }
 0x21e   :  { %646 = vst.msk [vmem:[%s1460_s4 + $0x8] sm:$0xff] %vm113_vm0, %v600_v51 }
 0x21f   :  { %v612_v56 = vpop.f32.mrf.mxu1 }
 0x220   :  { %650 = vst.msk [vmem:[%s1460_s4 + $0x28] sm:$0xff] %vm113_vm0, %v612_v56 }
 0x225   :  { %v603_v18 = vpop.f32.mrf.mxu0 }
 0x226   :  { %647 = vst.msk [vmem:[%s1460_s4 + $0x10] sm:$0xff] %vm113_vm0, %v603_v18 }
 0x229   :  { %v636_v28 = vpop.f32.mrf.mxu3 }
 0x22a   :  { %658 = vst.msk [vmem:[%s1460_s4 + $0x68] sm:$0xff] %vm113_vm0, %v636_v28  ;;  %v627_v58 = vpop.f32.mrf.mxu2 }
 0x22b   :  { %655 = vst.msk [vmem:[%s1460_s4 + $0x50] sm:$0xff] %vm113_vm0, %v627_v58  ;;  %v615_v44 = vpop.f32.mrf.mxu1 }
 0x22c   :  { %651 = vst.msk [vmem:[%s1460_s4 + $0x30] sm:$0xff] %vm113_vm0, %v615_v44 }
 0x231   :  { %v639_v40 = vpop.f32.mrf.mxu3 }
 0x232   :  { %659 = vst.msk [vmem:[%s1460_s4 + $0x70] sm:$0xff] %vm113_vm0, %v639_v40  ;;  %v630_v46 = vpop.f32.mrf.mxu2  ;;  %v606_v14 = vpop.f32.mrf.mxu0 }
 0x233   :  { %656 = vst.msk [vmem:[%s1460_s4 + $0x58] sm:$0xff] %vm113_vm0, %v630_v46  ;;  %v618_v2 = vpop.f32.mrf.mxu1 }
 0x234   :  { %648 = vst.msk [vmem:[%s1460_s4 + $0x18] sm:$0xff] %vm113_vm0, %v606_v14 }
 0x235   :  { %652 = vst.msk [vmem:[%s1460_s4 + $0x38] sm:$0xff] %vm113_vm0, %v618_v2 }
 0x239   :  { %v642_v42 = vpop.f32.mrf.mxu3 }
 0x23a   :  { %660 = vst.msk [vmem:[%s1460_s4 + $0x78] sm:$0xff] %vm113_vm0, %v642_v42 }

</bundles_post_ra>
